<compile_context>
chip_gen: v6e
topology: v6e:2x2x1
jax: 0.10.0
libtpu: 0.0.40
codegen_flags: <defaults>
</compile_context>

<pallas_src>
import functools
import math

import jax
import jax.numpy as jnp
from jax.experimental import pallas as pl
from jax.experimental.pallas import tpu as pltpu

BN_EPS = 1e-5
_VMEM_LIMIT = 48 * 1024 * 1024  # > 32 MiB scoped default, fits v7x 64 MiB/TC with headroom


# --------------------------------- kernels ---------------------------------


def _grid_term(g, wg):
    """(T, 3) grid tile times (3, Cout) weight as 3 VPU broadcast-FMAs.

    Keeps the K=3 skip-connection contribution off the MXU and removes the
    lane-unaligned concat([h, grid]) of the PyTorch graph entirely.
    """
    return (g[:, 0:1] * wg[0:1, :]
            + g[:, 1:2] * wg[1:2, :]
            + g[:, 2:3] * wg[2:3, :])


def _write_stats(st_ref, y):
    """Per-tile partial BatchNorm stats: rows = [sum(y), sum(y*y)], f32."""
    s = jnp.sum(y, axis=0, keepdims=True)
    ss = jnp.sum(y * y, axis=0, keepdims=True)
    st_ref[0, 0] = jnp.concatenate([s, ss], axis=0)


def _first_layer_kernel(x_ref, g_ref, wx_ref, wg_ref, b_ref, y_ref, st_ref):
    # x_ref : (1, 1, C)    latent of this batch (the N-fold repeat never hits HBM)
    # g_ref : (1, T, 3)    grid tile
    # wx_ref: (C, C) bf16  latent part of conv1 weight (K stays 128-aligned)
    # wg_ref: (3, C) f32   grid part of conv1 weight
    # y_ref : (1, T, C)    raw pre-BN activations (bn1 is folded into layer 2)
    # st_ref: (1, 1, 2, C) per-tile [sum, sumsq] partials (reduced in JAX)
    xw = jnp.dot(x_ref[0].astype(jnp.bfloat16), wx_ref[...],
                 preferred_element_type=jnp.float32)               # (1, C)
    y = xw + _grid_term(g_ref[0], wg_ref[...]) + b_ref[...]        # (T, C) f32
    y_ref[0] = y.astype(y_ref.dtype)
    _write_stats(st_ref, y)


def _mid_layer_kernel(y_in_ref, g_ref, scale_ref, shift_ref,
                      wh_ref, wg_ref, b_ref, y_ref, st_ref):
    # Fused: previous layer's BatchNorm (pre-folded scale/shift) + ReLU, then
    # this layer's 1x1 conv with split weights — one HBM pass per layer.
    h = jnp.maximum(
        y_in_ref[0].astype(jnp.float32) * scale_ref[...] + shift_ref[...], 0.0)
    hw = jnp.dot(h.astype(jnp.bfloat16), wh_ref[...],
                 preferred_element_type=jnp.float32)
    y = hw + _grid_term(g_ref[0], wg_ref[...]) + b_ref[...]
    y_ref[0] = y.astype(y_ref.dtype)
    _write_stats(st_ref, y)


def _last_layer_kernel(y_in_ref, g_ref, scale_ref, shift_ref,
                       wh_ref, wg_ref, b_ref, o_ref):
    # Fused: bn3 + ReLU + conv4 + tanh.  The (T, 3) output lowers to masked
    # lane stores, but FLOPs/bytes here are negligible.
    h = jnp.maximum(
        y_in_ref[0].astype(jnp.float32) * scale_ref[...] + shift_ref[...], 0.0)
    hw = jnp.dot(h.astype(jnp.bfloat16), wh_ref[...],
                 preferred_element_type=jnp.float32)
    o_ref[0] = jnp.tanh(hw + _grid_term(g_ref[0], wg_ref[...]) + b_ref[...])


# --------------------------------- wrapper ----------------------------------


def _nbytes(a):
    return math.prod(a.shape) * jnp.dtype(a.dtype).itemsize


def _cost(flops, operands, outs, transcendentals=0):
    nbytes = sum(_nbytes(a) for a in operands) + sum(_nbytes(o) for o in outs)
    return pl.CostEstimate(flops=int(flops), transcendentals=int(transcendentals),
                           bytes_accessed=int(nbytes))


def _fold_bn(stats, gamma, beta, count):
    """Global training-mode (biased) batch stats -> fused (scale, shift)."""
    s = jnp.sum(stats[:, :, 0, :], axis=(0, 1))
    ss = jnp.sum(stats[:, :, 1, :], axis=(0, 1))
    mean = s / count
    var = jnp.maximum(ss / count - mean * mean, 0.0)
    scale = gamma[0] * jax.lax.rsqrt(var + BN_EPS)
    shift = beta[0] - mean * scale
    # TODO(synk): torch BatchNorm1d also updates running_mean/running_var here
    # (a training-time side effect that does not affect the returned tensor).
    return scale[None, :], shift[None, :]


def _pick_tile_n(n, max_tile=512):
    if n <= max_tile:
        return n
    for t in range(max_tile, 7, -1):
        if n % t == 0 and t % 8 == 0:
            return t
    return n  # fall back: one tile spans the whole N of a batch


def pointgen_forward(x, grid, params, *, tile_n=None, act_dtype=jnp.bfloat16):
    """x: (B, C) latent, grid: (B, 3, N).  Returns (B, 3, N), matching the
    PyTorch module in training mode (BatchNorm over all B*N points)."""
    (w1x, w1g, b1, ga1, be1,
     w2x, w2g, b2, ga2, be2,
     w3x, w3g, b3, ga3, be3,
     w4x, w4g, b4) = params

    B, C = x.shape
    _, three, N = grid.shape
    assert three == 3
    if tile_n is None:
        tile_n = _pick_tile_n(N)
    assert N % tile_n == 0 and (tile_n % 8 == 0 or tile_n == N), \
        "tile_n must divide N and be a multiple of 8 (or equal N)"
    nt = N // tile_n
    count = float(B * N)

    # Glue only: channels-last grid and a (B, 1, C) view of the latent.
    g_cl = jnp.transpose(grid, (0, 2, 1))          # (B, N, 3)
    x3 = x[:, None, :]                             # (B, 1, C)

    cp = pltpu.CompilerParams(
        dimension_semantics=("parallel", "parallel"),   # shards over 2 TCs on v7x
        vmem_limit_bytes=_VMEM_LIMIT)

    g_spec = pl.BlockSpec((1, tile_n, 3), lambda i, j: (i, j, 0))

    def full_spec(arr):
        return pl.BlockSpec(arr.shape, lambda i, j, _nd=arr.ndim: (0,) * _nd)

    def act_out(cout):
        shapes = (jax.ShapeDtypeStruct((B, N, cout), act_dtype),
                  jax.ShapeDtypeStruct((B, nt, 2, cout), jnp.float32))
        specs = (pl.BlockSpec((1, tile_n, cout), lambda i, j: (i, j, 0)),
                 pl.BlockSpec((1, 1, 2, cout), lambda i, j: (i, j, 0, 0)))
        return shapes, specs

    # ---- layer 1: conv1 (latent part computed as a single (1, C) row) ------
    shapes1, specs1 = act_out(C)
    ins1 = (x3, g_cl, w1x, w1g, b1)
    y1, st1 = pl.pallas_call(
        _first_layer_kernel,
        out_shape=shapes1,
        grid=(B, nt),
        in_specs=[pl.BlockSpec((1, 1, C), lambda i, j: (i, 0, 0)),
                  g_spec, full_spec(w1x), full_spec(w1g), full_spec(b1)],
        out_specs=specs1,
        compiler_params=cp,
        cost_estimate=_cost(2 * B * nt * C * C + 10 * B * N * C, ins1, shapes1),
    )(*ins1)

    # ---- layers 2 & 3: fused (bn_{l-1} + ReLU) -> conv_l --------------------
    def mid_layer(y_in, stats_prev, gamma, beta, wh, wg, bias):
        cin, cout = wh.shape
        scale, shift = _fold_bn(stats_prev, gamma, beta, count)
        shapes, specs = act_out(cout)
        ins = (y_in, g_cl, scale, shift, wh, wg, bias)
        flops = 2 * B * N * cin * cout + 12 * B * N * cout
        return pl.pallas_call(
            _mid_layer_kernel,
            out_shape=shapes,
            grid=(B, nt),
            in_specs=[pl.BlockSpec((1, tile_n, cin), lambda i, j: (i, j, 0)),
                      g_spec, full_spec(scale), full_spec(shift),
                      full_spec(wh), full_spec(wg), full_spec(bias)],
            out_specs=specs,
            compiler_params=cp,
            cost_estimate=_cost(flops, ins, shapes),
        )(*ins)

    y2, st2 = mid_layer(y1, st1, ga1, be1, w2x, w2g, b2)   # bn1+relu -> conv2
    y3, st3 = mid_layer(y2, st2, ga2, be2, w3x, w3g, b3)   # bn2+relu -> conv3

    # ---- layer 4: fused bn3 + ReLU -> conv4 -> tanh -------------------------
    scale3, shift3 = _fold_bn(st3, ga3, be3, count)
    out_shape = jax.ShapeDtypeStruct((B, N, 3), jnp.float32)
    ins4 = (y3, g_cl, scale3, shift3, w4x, w4g, b4)
    out = pl.pallas_call(
        _last_layer_kernel,
        out_shape=out_shape,
        grid=(B, nt),
        in_specs=[pl.BlockSpec((1, tile_n, C // 4), lambda i, j: (i, j, 0)),
                  g_spec, full_spec(scale3), full_spec(shift3),
                  full_spec(w4x), full_spec(w4g), full_spec(b4)],
        out_specs=pl.BlockSpec((1, tile_n, 3), lambda i, j: (i, j, 0)),
        compiler_params=cp,
        cost_estimate=_cost(2 * B * N * (C // 4) * 3 + 12 * B * N * 3,
                            ins4, (out_shape,), transcendentals=3 * B * N),
    )(*ins4)

    return jnp.transpose(out, (0, 2, 1))                   # back to (B, 3, N)


# ------------------------- params & pure-JAX reference -----------------------


def init_params(key, bottleneck):
    """Synthetic parameters with the torch module's shapes; each conv weight is
    stored pre-split: hidden part (bf16, MXU operand) + 3-wide grid part (f32)."""
    C = bottleneck
    layer_dims = [(C, C), (C, C // 2), (C // 2, C // 4), (C // 4, 3)]
    keys = jax.random.split(key, 3 * len(layer_dims))
    params = []
    for i, (cin, cout) in enumerate(layer_dims):
        kh, kg, kb = keys[3 * i], keys[3 * i + 1], keys[3 * i + 2]
        wh = (0.1 * jax.random.normal(kh, (cin, cout), jnp.float32)).astype(jnp.bfloat16)
        wg = jax.random.normal(kg, (3, cout), jnp.float32)
        bias = 0.1 * jax.random.normal(kb, (1, cout), jnp.float32)
        params += [wh, wg, bias]
        if i < 3:  # bn1..bn3 affine (torch default init: gamma=1, beta=0)
            params += [jnp.ones((1, cout), jnp.float32),
                       jnp.zeros((1, cout), jnp.float32)]
    return tuple(params)


def reference_forward(x, grid, params):
    """Pure-JAX f32 reference with the PyTorch module's forward semantics
    (training-mode BatchNorm over all B*N points)."""
    (w1x, w1g, b1, ga1, be1,
     w2x, w2g, b2, ga2, be2,
     w3x, w3g, b3, ga3, be3,
     w4x, w4g, b4) = params
    B, C = x.shape
    N = grid.shape[2]
    g = jnp.transpose(grid, (0, 2, 1)).reshape(B * N, 3)
    h = jnp.broadcast_to(x[:, None, :], (B, N, C)).reshape(B * N, C)

    def conv(h_, wx, wg, bias):   # conv1d(cat([h, grid], 1)) with split weights
        return h_ @ wx.astype(jnp.float32) + g @ wg + bias

    def bn(y, gamma, beta):
        mu = jnp.mean(y, axis=0, keepdims=True)
        var = jnp.mean((y - mu) ** 2, axis=0, keepdims=True)
        return (y - mu) * jax.lax.rsqrt(var + BN_EPS) * gamma + beta

    h = jnp.maximum(bn(conv(h, w1x, w1g, b1), ga1, be1), 0.0)
    h = jnp.maximum(bn(conv(h, w2x, w2g, b2), ga2, be2), 0.0)
    h = jnp.maximum(bn(conv(h, w3x, w3g, b3), ga3, be3), 0.0)
    y = jnp.tanh(conv(h, w4x, w4g, b4))
    return jnp.transpose(y.reshape(B, N, 3), (0, 2, 1))


if __name__ == "__main__":
    key = jax.random.PRNGKey(0)
    kx, kg, kp = jax.random.split(key, 3)

    bottleneck_size = 32        # C; C//2, C//4 stay >= 8
    B, N = 2, 32
    tile_n = 16                 # grid = (B, N // tile_n) = (2, 2)

    x = jax.random.normal(kx, (B, bottleneck_size), jnp.float32)
    grid = jax.random.uniform(kg, (B, 3, N), jnp.float32)
    params = init_params(kp, bottleneck_size)

    fwd = jax.jit(functools.partial(pointgen_forward, tile_n=tile_n))
    out = fwd(x, grid, params)
    jax.block_until_ready(out)

    assert out.shape == (B, 3, N)
    assert bool(jnp.all(jnp.isfinite(out)))

    # Compare to the f32 reference (kernel uses bf16 matmul inputs -> relaxed tol).
    ref = reference_forward(x, grid, params)
    max_err = float(jnp.max(jnp.abs(out - ref)))
    assert max_err < 7.5e-2, f"kernel/reference mismatch: max_err={max_err}"
    print("KERNEL_OK")
</pallas_src>

<mosaic_0001>
module attributes {stable_mosaic.version = 11 : i64} {
  func.func @_first_layer_kernel(%arg0: i32, %arg1: i32, %arg2: memref<1x1x32xf32, #tpu.memory_space<vmem>>, %arg3: memref<1x16x3xf32, #tpu.memory_space<vmem>>, %arg4: memref<32x32xbf16, #tpu.memory_space<vmem>>, %arg5: memref<3x32xf32, #tpu.memory_space<vmem>>, %arg6: memref<1x32xf32, #tpu.memory_space<vmem>>, %arg7: memref<1x16x32xbf16, #tpu.memory_space<vmem>>, %arg8: memref<1x1x2x32xf32, #tpu.memory_space<vmem>>) attributes {dimension_semantics = [#tpu.dimension_semantics<parallel>, #tpu.dimension_semantics<parallel>], iteration_bounds = array<i64: 2, 2>, scalar_prefetch = 0 : i64, scratch_operands = 0 : i64, tpu.core_type = #tpu.core_type<tc>, window_params = [{transform_indices = @transform_0, window_bounds = array<i64: 1, 1, 32>}, {transform_indices = @transform_1, window_bounds = array<i64: 1, 16, 3>}, {pipeline_mode = #tpu.pipeline_mode<synchronous>, transform_indices = @transform_2, window_bounds = array<i64: 32, 32>}, {pipeline_mode = #tpu.pipeline_mode<synchronous>, transform_indices = @transform_3, window_bounds = array<i64: 3, 32>}, {pipeline_mode = #tpu.pipeline_mode<synchronous>, transform_indices = @transform_4, window_bounds = array<i64: 1, 32>}, {transform_indices = @transform_5, window_bounds = array<i64: 1, 16, 32>}, {transform_indices = @transform_6, window_bounds = array<i64: 1, 1, 2, 32>}]} {
    %c0 = arith.constant 0 : index
    %c0_0 = arith.constant 0 : index
    %c0_1 = arith.constant 0 : index
    %0 = vector.load %arg2[%c0, %c0_0, %c0_1] : memref<1x1x32xf32, #tpu.memory_space<vmem>>, vector<1x1x32xf32>
    %1 = vector.shape_cast %0 : vector<1x1x32xf32> to vector<1x32xf32>
    %2 = arith.truncf %1 : vector<1x32xf32> to vector<1x32xbf16>
    %c0_2 = arith.constant 0 : index
    %c0_3 = arith.constant 0 : index
    %3 = vector.load %arg4[%c0_2, %c0_3] : memref<32x32xbf16, #tpu.memory_space<vmem>>, vector<32x32xbf16>
    %cst = arith.constant dense<0.000000e+00> : vector<1x32xf32>
    %4 = tpu.matmul %2, %3, %cst {dimension_numbers = #tpu.dot_dimension_numbers<[1], [0], [0], [1], [0, 0, 1, 1], [], []>} : vector<1x32xbf16>, vector<32x32xbf16>, vector<1x32xf32> -> vector<1x32xf32>
    %c0_4 = arith.constant 0 : index
    %c0_5 = arith.constant 0 : index
    %c0_6 = arith.constant 0 : index
    %5 = vector.load %arg3[%c0_4, %c0_5, %c0_6] : memref<1x16x3xf32, #tpu.memory_space<vmem>>, vector<1x16x3xf32>
    %6 = vector.shape_cast %5 : vector<1x16x3xf32> to vector<16x3xf32>
    %c0_7 = arith.constant 0 : index
    %c0_8 = arith.constant 0 : index
    %7 = vector.load %arg5[%c0_7, %c0_8] : memref<3x32xf32, #tpu.memory_space<vmem>>, vector<3x32xf32>
    %8 = vector.extract_strided_slice %6 {offsets = [0, 0], sizes = [16, 1], strides = [1, 1]} : vector<16x3xf32> to vector<16x1xf32>
    %9 = vector.extract_strided_slice %7 {offsets = [0, 0], sizes = [1, 32], strides = [1, 1]} : vector<3x32xf32> to vector<1x32xf32>
    %10 = vector.broadcast %8 : vector<16x1xf32> to vector<16x32xf32>
    %11 = vector.broadcast %9 : vector<1x32xf32> to vector<16x32xf32>
    %12 = arith.mulf %10, %11 : vector<16x32xf32>
    %13 = vector.extract_strided_slice %6 {offsets = [0, 1], sizes = [16, 1], strides = [1, 1]} : vector<16x3xf32> to vector<16x1xf32>
    %14 = vector.extract_strided_slice %7 {offsets = [1, 0], sizes = [1, 32], strides = [1, 1]} : vector<3x32xf32> to vector<1x32xf32>
    %15 = vector.broadcast %13 : vector<16x1xf32> to vector<16x32xf32>
    %16 = vector.broadcast %14 : vector<1x32xf32> to vector<16x32xf32>
    %17 = arith.mulf %15, %16 : vector<16x32xf32>
    %18 = arith.addf %12, %17 : vector<16x32xf32>
    %19 = vector.extract_strided_slice %6 {offsets = [0, 2], sizes = [16, 1], strides = [1, 1]} : vector<16x3xf32> to vector<16x1xf32>
    %20 = vector.extract_strided_slice %7 {offsets = [2, 0], sizes = [1, 32], strides = [1, 1]} : vector<3x32xf32> to vector<1x32xf32>
    %21 = vector.broadcast %19 : vector<16x1xf32> to vector<16x32xf32>
    %22 = vector.broadcast %20 : vector<1x32xf32> to vector<16x32xf32>
    %23 = arith.mulf %21, %22 : vector<16x32xf32>
    %24 = arith.addf %18, %23 : vector<16x32xf32>
    %25 = vector.broadcast %4 : vector<1x32xf32> to vector<16x32xf32>
    %26 = arith.addf %25, %24 : vector<16x32xf32>
    %c0_9 = arith.constant 0 : index
    %c0_10 = arith.constant 0 : index
    %27 = vector.load %arg6[%c0_9, %c0_10] : memref<1x32xf32, #tpu.memory_space<vmem>>, vector<1x32xf32>
    %28 = vector.broadcast %27 : vector<1x32xf32> to vector<16x32xf32>
    %29 = arith.addf %26, %28 : vector<16x32xf32>
    %30 = arith.truncf %29 : vector<16x32xf32> to vector<16x32xbf16>
    %c0_11 = arith.constant 0 : index
    %c0_12 = arith.constant 0 : index
    %c0_13 = arith.constant 0 : index
    %31 = vector.load %arg7[%c0_11, %c0_12, %c0_13] : memref<1x16x32xbf16, #tpu.memory_space<vmem>>, vector<1x16x32xbf16>
    %32 = vector.shape_cast %31 : vector<1x16x32xbf16> to vector<16x32xbf16>
    %33 = vector.shape_cast %30 : vector<16x32xbf16> to vector<1x16x32xbf16>
    tpu.vector_store %arg7[%c0_11, %c0_12, %c0_13], %33 {strides = array<i32>} : memref<1x16x32xbf16, #tpu.memory_space<vmem>>, vector<1x16x32xbf16>,
    %cst_14 = arith.constant dense<0.000000e+00> : vector<32xf32>
    %34 = vector.multi_reduction <add>, %29, %cst_14 [0] : vector<16x32xf32> to vector<32xf32>
    %35 = vector.shape_cast %34 : vector<32xf32> to vector<1x32xf32>
    %36 = arith.mulf %29, %29 : vector<16x32xf32>
    %cst_15 = arith.constant dense<0.000000e+00> : vector<32xf32>
    %37 = vector.multi_reduction <add>, %36, %cst_15 [0] : vector<16x32xf32> to vector<32xf32>
    %38 = vector.shape_cast %37 : vector<32xf32> to vector<1x32xf32>
    %39 = tpu.concatenate %35, %38 in 0 : vector<1x32xf32>, vector<1x32xf32> -> vector<2x32xf32>
    %c0_16 = arith.constant 0 : index
    %c0_17 = arith.constant 0 : index
    %c0_18 = arith.constant 0 : index
    %c0_19 = arith.constant 0 : index
    %40 = vector.load %arg8[%c0_16, %c0_17, %c0_18, %c0_19] : memref<1x1x2x32xf32, #tpu.memory_space<vmem>>, vector<1x1x2x32xf32>
    %41 = vector.shape_cast %40 : vector<1x1x2x32xf32> to vector<2x32xf32>
    %42 = vector.shape_cast %39 : vector<2x32xf32> to vector<1x1x2x32xf32>
    tpu.vector_store %arg8[%c0_16, %c0_17, %c0_18, %c0_19], %42 {strides = array<i32>} : memref<1x1x2x32xf32, #tpu.memory_space<vmem>>, vector<1x1x2x32xf32>,
    return
  }
  func.func @transform_0(%arg0: i32, %arg1: i32) -> (i32, i32, i32) {
    %c0_i32 = arith.constant 0 : i32
    %c0_i32_0 = arith.constant 0 : i32
    %c0_i32_1 = arith.constant 0 : i32
    return %arg0, %c0_i32, %c0_i32_0 : i32, i32, i32
  }
  func.func @transform_1(%arg0: i32, %arg1: i32) -> (i32, i32, i32) {
    %c0_i32 = arith.constant 0 : i32
    %c0_i32_0 = arith.constant 0 : i32
    return %arg0, %arg1, %c0_i32 : i32, i32, i32
  }
  func.func @transform_2(%arg0: i32, %arg1: i32) -> (i32, i32) {
    %c0_i32 = arith.constant 0 : i32
    %c0_i32_0 = arith.constant 0 : i32
    %c0_i32_1 = arith.constant 0 : i32
    return %c0_i32, %c0_i32_0 : i32, i32
  }
  func.func @transform_3(%arg0: i32, %arg1: i32) -> (i32, i32) {
    %c0_i32 = arith.constant 0 : i32
    %c0_i32_0 = arith.constant 0 : i32
    %c0_i32_1 = arith.constant 0 : i32
    return %c0_i32, %c0_i32_0 : i32, i32
  }
  func.func @transform_4(%arg0: i32, %arg1: i32) -> (i32, i32) {
    %c0_i32 = arith.constant 0 : i32
    %c0_i32_0 = arith.constant 0 : i32
    %c0_i32_1 = arith.constant 0 : i32
    return %c0_i32, %c0_i32_0 : i32, i32
  }
  func.func @transform_5(%arg0: i32, %arg1: i32) -> (i32, i32, i32) {
    %c0_i32 = arith.constant 0 : i32
    %c0_i32_0 = arith.constant 0 : i32
    return %arg0, %arg1, %c0_i32 : i32, i32, i32
  }
  func.func @transform_6(%arg0: i32, %arg1: i32) -> (i32, i32, i32, i32) {
    %c0_i32 = arith.constant 0 : i32
    %c0_i32_0 = arith.constant 0 : i32
    %c0_i32_1 = arith.constant 0 : i32
    return %arg0, %arg1, %c0_i32, %c0_i32_0 : i32, i32, i32, i32
  }
}

module attributes {stable_mosaic.version = 11 : i64} {
  func.func @_mid_layer_kernel(%arg0: i32, %arg1: i32, %arg2: memref<1x16x32xbf16, #tpu.memory_space<vmem>>, %arg3: memref<1x16x3xf32, #tpu.memory_space<vmem>>, %arg4: memref<1x32xf32, #tpu.memory_space<vmem>>, %arg5: memref<1x32xf32, #tpu.memory_space<vmem>>, %arg6: memref<32x16xbf16, #tpu.memory_space<vmem>>, %arg7: memref<3x16xf32, #tpu.memory_space<vmem>>, %arg8: memref<1x16xf32, #tpu.memory_space<vmem>>, %arg9: memref<1x16x16xbf16, #tpu.memory_space<vmem>>, %arg10: memref<1x1x2x16xf32, #tpu.memory_space<vmem>>) attributes {dimension_semantics = [#tpu.dimension_semantics<parallel>, #tpu.dimension_semantics<parallel>], iteration_bounds = array<i64: 2, 2>, scalar_prefetch = 0 : i64, scratch_operands = 0 : i64, tpu.core_type = #tpu.core_type<tc>, window_params = [{transform_indices = @transform_0, window_bounds = array<i64: 1, 16, 32>}, {transform_indices = @transform_1, window_bounds = array<i64: 1, 16, 3>}, {pipeline_mode = #tpu.pipeline_mode<synchronous>, transform_indices = @transform_2, window_bounds = array<i64: 1, 32>}, {pipeline_mode = #tpu.pipeline_mode<synchronous>, transform_indices = @transform_3, window_bounds = array<i64: 1, 32>}, {pipeline_mode = #tpu.pipeline_mode<synchronous>, transform_indices = @transform_4, window_bounds = array<i64: 32, 16>}, {pipeline_mode = #tpu.pipeline_mode<synchronous>, transform_indices = @transform_5, window_bounds = array<i64: 3, 16>}, {pipeline_mode = #tpu.pipeline_mode<synchronous>, transform_indices = @transform_6, window_bounds = array<i64: 1, 16>}, {transform_indices = @transform_7, window_bounds = array<i64: 1, 16, 16>}, {transform_indices = @transform_8, window_bounds = array<i64: 1, 1, 2, 16>}]} {
    %c0 = arith.constant 0 : index
    %c0_0 = arith.constant 0 : index
    %c0_1 = arith.constant 0 : index
    %0 = vector.load %arg2[%c0, %c0_0, %c0_1] : memref<1x16x32xbf16, #tpu.memory_space<vmem>>, vector<1x16x32xbf16>
    %1 = vector.shape_cast %0 : vector<1x16x32xbf16> to vector<16x32xbf16>
    %2 = arith.extf %1 : vector<16x32xbf16> to vector<16x32xf32>
    %c0_2 = arith.constant 0 : index
    %c0_3 = arith.constant 0 : index
    %3 = vector.load %arg4[%c0_2, %c0_3] : memref<1x32xf32, #tpu.memory_space<vmem>>, vector<1x32xf32>
    %4 = vector.broadcast %3 : vector<1x32xf32> to vector<16x32xf32>
    %5 = arith.mulf %2, %4 : vector<16x32xf32>
    %c0_4 = arith.constant 0 : index
    %c0_5 = arith.constant 0 : index
    %6 = vector.load %arg5[%c0_4, %c0_5] : memref<1x32xf32, #tpu.memory_space<vmem>>, vector<1x32xf32>
    %7 = vector.broadcast %6 : vector<1x32xf32> to vector<16x32xf32>
    %8 = arith.addf %5, %7 : vector<16x32xf32>
    %cst = arith.constant 0.000000e+00 : f32
    %9 = vector.broadcast %cst : f32 to vector<16x32xf32>
    %10 = arith.maximumf %8, %9 : vector<16x32xf32>
    %11 = arith.truncf %10 : vector<16x32xf32> to vector<16x32xbf16>
    %c0_6 = arith.constant 0 : index
    %c0_7 = arith.constant 0 : index
    %12 = vector.load %arg6[%c0_6, %c0_7] : memref<32x16xbf16, #tpu.memory_space<vmem>>, vector<32x16xbf16>
    %cst_8 = arith.constant dense<0.000000e+00> : vector<16x16xf32>
    %13 = tpu.matmul %11, %12, %cst_8 {dimension_numbers = #tpu.dot_dimension_numbers<[1], [0], [0], [1], [0, 0, 1, 1], [], []>} : vector<16x32xbf16>, vector<32x16xbf16>, vector<16x16xf32> -> vector<16x16xf32>
    %c0_9 = arith.constant 0 : index
    %c0_10 = arith.constant 0 : index
    %c0_11 = arith.constant 0 : index
    %14 = vector.load %arg3[%c0_9, %c0_10, %c0_11] : memref<1x16x3xf32, #tpu.memory_space<vmem>>, vector<1x16x3xf32>
    %15 = vector.shape_cast %14 : vector<1x16x3xf32> to vector<16x3xf32>
    %c0_12 = arith.constant 0 : index
    %c0_13 = arith.constant 0 : index
    %16 = vector.load %arg7[%c0_12, %c0_13] : memref<3x16xf32, #tpu.memory_space<vmem>>, vector<3x16xf32>
    %17 = vector.extract_strided_slice %15 {offsets = [0, 0], sizes = [16, 1], strides = [1, 1]} : vector<16x3xf32> to vector<16x1xf32>
    %18 = vector.extract_strided_slice %16 {offsets = [0, 0], sizes = [1, 16], strides = [1, 1]} : vector<3x16xf32> to vector<1x16xf32>
    %19 = vector.broadcast %17 : vector<16x1xf32> to vector<16x16xf32>
    %20 = vector.broadcast %18 : vector<1x16xf32> to vector<16x16xf32>
    %21 = arith.mulf %19, %20 : vector<16x16xf32>
    %22 = vector.extract_strided_slice %15 {offsets = [0, 1], sizes = [16, 1], strides = [1, 1]} : vector<16x3xf32> to vector<16x1xf32>
    %23 = vector.extract_strided_slice %16 {offsets = [1, 0], sizes = [1, 16], strides = [1, 1]} : vector<3x16xf32> to vector<1x16xf32>
    %24 = vector.broadcast %22 : vector<16x1xf32> to vector<16x16xf32>
    %25 = vector.broadcast %23 : vector<1x16xf32> to vector<16x16xf32>
    %26 = arith.mulf %24, %25 : vector<16x16xf32>
    %27 = arith.addf %21, %26 : vector<16x16xf32>
    %28 = vector.extract_strided_slice %15 {offsets = [0, 2], sizes = [16, 1], strides = [1, 1]} : vector<16x3xf32> to vector<16x1xf32>
    %29 = vector.extract_strided_slice %16 {offsets = [2, 0], sizes = [1, 16], strides = [1, 1]} : vector<3x16xf32> to vector<1x16xf32>
    %30 = vector.broadcast %28 : vector<16x1xf32> to vector<16x16xf32>
    %31 = vector.broadcast %29 : vector<1x16xf32> to vector<16x16xf32>
    %32 = arith.mulf %30, %31 : vector<16x16xf32>
    %33 = arith.addf %27, %32 : vector<16x16xf32>
    %34 = arith.addf %13, %33 : vector<16x16xf32>
    %c0_14 = arith.constant 0 : index
    %c0_15 = arith.constant 0 : index
    %35 = vector.load %arg8[%c0_14, %c0_15] : memref<1x16xf32, #tpu.memory_space<vmem>>, vector<1x16xf32>
    %36 = vector.broadcast %35 : vector<1x16xf32> to vector<16x16xf32>
    %37 = arith.addf %34, %36 : vector<16x16xf32>
    %38 = arith.truncf %37 : vector<16x16xf32> to vector<16x16xbf16>
    %c0_16 = arith.constant 0 : index
    %c0_17 = arith.constant 0 : index
    %c0_18 = arith.constant 0 : index
    %39 = vector.load %arg9[%c0_16, %c0_17, %c0_18] : memref<1x16x16xbf16, #tpu.memory_space<vmem>>, vector<1x16x16xbf16>
    %40 = vector.shape_cast %39 : vector<1x16x16xbf16> to vector<16x16xbf16>
    %41 = vector.shape_cast %38 : vector<16x16xbf16> to vector<1x16x16xbf16>
    tpu.vector_store %arg9[%c0_16, %c0_17, %c0_18], %41 {strides = array<i32>} : memref<1x16x16xbf16, #tpu.memory_space<vmem>>, vector<1x16x16xbf16>,
    %cst_19 = arith.constant dense<0.000000e+00> : vector<16xf32>
    %42 = vector.multi_reduction <add>, %37, %cst_19 [0] : vector<16x16xf32> to vector<16xf32>
    %43 = vector.shape_cast %42 : vector<16xf32> to vector<1x16xf32>
    %44 = arith.mulf %37, %37 : vector<16x16xf32>
    %cst_20 = arith.constant dense<0.000000e+00> : vector<16xf32>
    %45 = vector.multi_reduction <add>, %44, %cst_20 [0] : vector<16x16xf32> to vector<16xf32>
    %46 = vector.shape_cast %45 : vector<16xf32> to vector<1x16xf32>
    %47 = tpu.concatenate %43, %46 in 0 : vector<1x16xf32>, vector<1x16xf32> -> vector<2x16xf32>
    %c0_21 = arith.constant 0 : index
    %c0_22 = arith.constant 0 : index
    %c0_23 = arith.constant 0 : index
    %c0_24 = arith.constant 0 : index
    %48 = vector.load %arg10[%c0_21, %c0_22, %c0_23, %c0_24] : memref<1x1x2x16xf32, #tpu.memory_space<vmem>>, vector<1x1x2x16xf32>
    %49 = vector.shape_cast %48 : vector<1x1x2x16xf32> to vector<2x16xf32>
    %50 = vector.shape_cast %47 : vector<2x16xf32> to vector<1x1x2x16xf32>
    tpu.vector_store %arg10[%c0_21, %c0_22, %c0_23, %c0_24], %50 {strides = array<i32>} : memref<1x1x2x16xf32, #tpu.memory_space<vmem>>, vector<1x1x2x16xf32>,
    return
  }
  func.func @transform_0(%arg0: i32, %arg1: i32) -> (i32, i32, i32) {
    %c0_i32 = arith.constant 0 : i32
    %c0_i32_0 = arith.constant 0 : i32
    return %arg0, %arg1, %c0_i32 : i32, i32, i32
  }
  func.func @transform_1(%arg0: i32, %arg1: i32) -> (i32, i32, i32) {
    %c0_i32 = arith.constant 0 : i32
    %c0_i32_0 = arith.constant 0 : i32
    return %arg0, %arg1, %c0_i32 : i32, i32, i32
  }
  func.func @transform_2(%arg0: i32, %arg1: i32) -> (i32, i32) {
    %c0_i32 = arith.constant 0 : i32
    %c0_i32_0 = arith.constant 0 : i32
    %c0_i32_1 = arith.constant 0 : i32
    return %c0_i32, %c0_i32_0 : i32, i32
  }
  func.func @transform_3(%arg0: i32, %arg1: i32) -> (i32, i32) {
    %c0_i32 = arith.constant 0 : i32
    %c0_i32_0 = arith.constant 0 : i32
    %c0_i32_1 = arith.constant 0 : i32
    return %c0_i32, %c0_i32_0 : i32, i32
  }
  func.func @transform_4(%arg0: i32, %arg1: i32) -> (i32, i32) {
    %c0_i32 = arith.constant 0 : i32
    %c0_i32_0 = arith.constant 0 : i32
    %c0_i32_1 = arith.constant 0 : i32
    return %c0_i32, %c0_i32_0 : i32, i32
  }
  func.func @transform_5(%arg0: i32, %arg1: i32) -> (i32, i32) {
    %c0_i32 = arith.constant 0 : i32
    %c0_i32_0 = arith.constant 0 : i32
    %c0_i32_1 = arith.constant 0 : i32
    return %c0_i32, %c0_i32_0 : i32, i32
  }
  func.func @transform_6(%arg0: i32, %arg1: i32) -> (i32, i32) {
    %c0_i32 = arith.constant 0 : i32
    %c0_i32_0 = arith.constant 0 : i32
    %c0_i32_1 = arith.constant 0 : i32
    return %c0_i32, %c0_i32_0 : i32, i32
  }
  func.func @transform_7(%arg0: i32, %arg1: i32) -> (i32, i32, i32) {
    %c0_i32 = arith.constant 0 : i32
    %c0_i32_0 = arith.constant 0 : i32
    return %arg0, %arg1, %c0_i32 : i32, i32, i32
  }
  func.func @transform_8(%arg0: i32, %arg1: i32) -> (i32, i32, i32, i32) {
    %c0_i32 = arith.constant 0 : i32
    %c0_i32_0 = arith.constant 0 : i32
    %c0_i32_1 = arith.constant 0 : i32
    return %arg0, %arg1, %c0_i32, %c0_i32_0 : i32, i32, i32, i32
  }
}

module attributes {stable_mosaic.version = 11 : i64} {
  func.func @_mid_layer_kernel(%arg0: i32, %arg1: i32, %arg2: memref<1x16x16xbf16, #tpu.memory_space<vmem>>, %arg3: memref<1x16x3xf32, #tpu.memory_space<vmem>>, %arg4: memref<1x16xf32, #tpu.memory_space<vmem>>, %arg5: memref<1x16xf32, #tpu.memory_space<vmem>>, %arg6: memref<16x8xbf16, #tpu.memory_space<vmem>>, %arg7: memref<3x8xf32, #tpu.memory_space<vmem>>, %arg8: memref<1x8xf32, #tpu.memory_space<vmem>>, %arg9: memref<1x16x8xbf16, #tpu.memory_space<vmem>>, %arg10: memref<1x1x2x8xf32, #tpu.memory_space<vmem>>) attributes {dimension_semantics = [#tpu.dimension_semantics<parallel>, #tpu.dimension_semantics<parallel>], iteration_bounds = array<i64: 2, 2>, scalar_prefetch = 0 : i64, scratch_operands = 0 : i64, tpu.core_type = #tpu.core_type<tc>, window_params = [{transform_indices = @transform_0, window_bounds = array<i64: 1, 16, 16>}, {transform_indices = @transform_1, window_bounds = array<i64: 1, 16, 3>}, {pipeline_mode = #tpu.pipeline_mode<synchronous>, transform_indices = @transform_2, window_bounds = array<i64: 1, 16>}, {pipeline_mode = #tpu.pipeline_mode<synchronous>, transform_indices = @transform_3, window_bounds = array<i64: 1, 16>}, {pipeline_mode = #tpu.pipeline_mode<synchronous>, transform_indices = @transform_4, window_bounds = array<i64: 16, 8>}, {pipeline_mode = #tpu.pipeline_mode<synchronous>, transform_indices = @transform_5, window_bounds = array<i64: 3, 8>}, {pipeline_mode = #tpu.pipeline_mode<synchronous>, transform_indices = @transform_6, window_bounds = array<i64: 1, 8>}, {transform_indices = @transform_7, window_bounds = array<i64: 1, 16, 8>}, {transform_indices = @transform_8, window_bounds = array<i64: 1, 1, 2, 8>}]} {
    %c0 = arith.constant 0 : index
    %c0_0 = arith.constant 0 : index
    %c0_1 = arith.constant 0 : index
    %0 = vector.load %arg2[%c0, %c0_0, %c0_1] : memref<1x16x16xbf16, #tpu.memory_space<vmem>>, vector<1x16x16xbf16>
    %1 = vector.shape_cast %0 : vector<1x16x16xbf16> to vector<16x16xbf16>
    %2 = arith.extf %1 : vector<16x16xbf16> to vector<16x16xf32>
    %c0_2 = arith.constant 0 : index
    %c0_3 = arith.constant 0 : index
    %3 = vector.load %arg4[%c0_2, %c0_3] : memref<1x16xf32, #tpu.memory_space<vmem>>, vector<1x16xf32>
    %4 = vector.broadcast %3 : vector<1x16xf32> to vector<16x16xf32>
    %5 = arith.mulf %2, %4 : vector<16x16xf32>
    %c0_4 = arith.constant 0 : index
    %c0_5 = arith.constant 0 : index
    %6 = vector.load %arg5[%c0_4, %c0_5] : memref<1x16xf32, #tpu.memory_space<vmem>>, vector<1x16xf32>
    %7 = vector.broadcast %6 : vector<1x16xf32> to vector<16x16xf32>
    %8 = arith.addf %5, %7 : vector<16x16xf32>
    %cst = arith.constant 0.000000e+00 : f32
    %9 = vector.broadcast %cst : f32 to vector<16x16xf32>
    %10 = arith.maximumf %8, %9 : vector<16x16xf32>
    %11 = arith.truncf %10 : vector<16x16xf32> to vector<16x16xbf16>
    %c0_6 = arith.constant 0 : index
    %c0_7 = arith.constant 0 : index
    %12 = vector.load %arg6[%c0_6, %c0_7] : memref<16x8xbf16, #tpu.memory_space<vmem>>, vector<16x8xbf16>
    %cst_8 = arith.constant dense<0.000000e+00> : vector<16x8xf32>
    %13 = tpu.matmul %11, %12, %cst_8 {dimension_numbers = #tpu.dot_dimension_numbers<[1], [0], [0], [1], [0, 0, 1, 1], [], []>} : vector<16x16xbf16>, vector<16x8xbf16>, vector<16x8xf32> -> vector<16x8xf32>
    %c0_9 = arith.constant 0 : index
    %c0_10 = arith.constant 0 : index
    %c0_11 = arith.constant 0 : index
    %14 = vector.load %arg3[%c0_9, %c0_10, %c0_11] : memref<1x16x3xf32, #tpu.memory_space<vmem>>, vector<1x16x3xf32>
    %15 = vector.shape_cast %14 : vector<1x16x3xf32> to vector<16x3xf32>
    %c0_12 = arith.constant 0 : index
    %c0_13 = arith.constant 0 : index
    %16 = vector.load %arg7[%c0_12, %c0_13] : memref<3x8xf32, #tpu.memory_space<vmem>>, vector<3x8xf32>
    %17 = vector.extract_strided_slice %15 {offsets = [0, 0], sizes = [16, 1], strides = [1, 1]} : vector<16x3xf32> to vector<16x1xf32>
    %18 = vector.extract_strided_slice %16 {offsets = [0, 0], sizes = [1, 8], strides = [1, 1]} : vector<3x8xf32> to vector<1x8xf32>
    %19 = vector.broadcast %17 : vector<16x1xf32> to vector<16x8xf32>
    %20 = vector.broadcast %18 : vector<1x8xf32> to vector<16x8xf32>
    %21 = arith.mulf %19, %20 : vector<16x8xf32>
    %22 = vector.extract_strided_slice %15 {offsets = [0, 1], sizes = [16, 1], strides = [1, 1]} : vector<16x3xf32> to vector<16x1xf32>
    %23 = vector.extract_strided_slice %16 {offsets = [1, 0], sizes = [1, 8], strides = [1, 1]} : vector<3x8xf32> to vector<1x8xf32>
    %24 = vector.broadcast %22 : vector<16x1xf32> to vector<16x8xf32>
    %25 = vector.broadcast %23 : vector<1x8xf32> to vector<16x8xf32>
    %26 = arith.mulf %24, %25 : vector<16x8xf32>
    %27 = arith.addf %21, %26 : vector<16x8xf32>
    %28 = vector.extract_strided_slice %15 {offsets = [0, 2], sizes = [16, 1], strides = [1, 1]} : vector<16x3xf32> to vector<16x1xf32>
    %29 = vector.extract_strided_slice %16 {offsets = [2, 0], sizes = [1, 8], strides = [1, 1]} : vector<3x8xf32> to vector<1x8xf32>
    %30 = vector.broadcast %28 : vector<16x1xf32> to vector<16x8xf32>
    %31 = vector.broadcast %29 : vector<1x8xf32> to vector<16x8xf32>
    %32 = arith.mulf %30, %31 : vector<16x8xf32>
    %33 = arith.addf %27, %32 : vector<16x8xf32>
    %34 = arith.addf %13, %33 : vector<16x8xf32>
    %c0_14 = arith.constant 0 : index
    %c0_15 = arith.constant 0 : index
    %35 = vector.load %arg8[%c0_14, %c0_15] : memref<1x8xf32, #tpu.memory_space<vmem>>, vector<1x8xf32>
    %36 = vector.broadcast %35 : vector<1x8xf32> to vector<16x8xf32>
    %37 = arith.addf %34, %36 : vector<16x8xf32>
    %38 = arith.truncf %37 : vector<16x8xf32> to vector<16x8xbf16>
    %c0_16 = arith.constant 0 : index
    %c0_17 = arith.constant 0 : index
    %c0_18 = arith.constant 0 : index
    %39 = vector.load %arg9[%c0_16, %c0_17, %c0_18] : memref<1x16x8xbf16, #tpu.memory_space<vmem>>, vector<1x16x8xbf16>
    %40 = vector.shape_cast %39 : vector<1x16x8xbf16> to vector<16x8xbf16>
    %41 = vector.shape_cast %38 : vector<16x8xbf16> to vector<1x16x8xbf16>
    tpu.vector_store %arg9[%c0_16, %c0_17, %c0_18], %41 {strides = array<i32>} : memref<1x16x8xbf16, #tpu.memory_space<vmem>>, vector<1x16x8xbf16>,
    %cst_19 = arith.constant dense<0.000000e+00> : vector<8xf32>
    %42 = vector.multi_reduction <add>, %37, %cst_19 [0] : vector<16x8xf32> to vector<8xf32>
    %43 = vector.shape_cast %42 : vector<8xf32> to vector<1x8xf32>
    %44 = arith.mulf %37, %37 : vector<16x8xf32>
    %cst_20 = arith.constant dense<0.000000e+00> : vector<8xf32>
    %45 = vector.multi_reduction <add>, %44, %cst_20 [0] : vector<16x8xf32> to vector<8xf32>
    %46 = vector.shape_cast %45 : vector<8xf32> to vector<1x8xf32>
    %47 = tpu.concatenate %43, %46 in 0 : vector<1x8xf32>, vector<1x8xf32> -> vector<2x8xf32>
    %c0_21 = arith.constant 0 : index
    %c0_22 = arith.constant 0 : index
    %c0_23 = arith.constant 0 : index
    %c0_24 = arith.constant 0 : index
    %48 = vector.load %arg10[%c0_21, %c0_22, %c0_23, %c0_24] : memref<1x1x2x8xf32, #tpu.memory_space<vmem>>, vector<1x1x2x8xf32>
    %49 = vector.shape_cast %48 : vector<1x1x2x8xf32> to vector<2x8xf32>
    %50 = vector.shape_cast %47 : vector<2x8xf32> to vector<1x1x2x8xf32>
    tpu.vector_store %arg10[%c0_21, %c0_22, %c0_23, %c0_24], %50 {strides = array<i32>} : memref<1x1x2x8xf32, #tpu.memory_space<vmem>>, vector<1x1x2x8xf32>,
    return
  }
  func.func @transform_0(%arg0: i32, %arg1: i32) -> (i32, i32, i32) {
    %c0_i32 = arith.constant 0 : i32
    %c0_i32_0 = arith.constant 0 : i32
    return %arg0, %arg1, %c0_i32 : i32, i32, i32
  }
  func.func @transform_1(%arg0: i32, %arg1: i32) -> (i32, i32, i32) {
    %c0_i32 = arith.constant 0 : i32
    %c0_i32_0 = arith.constant 0 : i32
    return %arg0, %arg1, %c0_i32 : i32, i32, i32
  }
  func.func @transform_2(%arg0: i32, %arg1: i32) -> (i32, i32) {
    %c0_i32 = arith.constant 0 : i32
    %c0_i32_0 = arith.constant 0 : i32
    %c0_i32_1 = arith.constant 0 : i32
    return %c0_i32, %c0_i32_0 : i32, i32
  }
  func.func @transform_3(%arg0: i32, %arg1: i32) -> (i32, i32) {
    %c0_i32 = arith.constant 0 : i32
    %c0_i32_0 = arith.constant 0 : i32
    %c0_i32_1 = arith.constant 0 : i32
    return %c0_i32, %c0_i32_0 : i32, i32
  }
  func.func @transform_4(%arg0: i32, %arg1: i32) -> (i32, i32) {
    %c0_i32 = arith.constant 0 : i32
    %c0_i32_0 = arith.constant 0 : i32
    %c0_i32_1 = arith.constant 0 : i32
    return %c0_i32, %c0_i32_0 : i32, i32
  }
  func.func @transform_5(%arg0: i32, %arg1: i32) -> (i32, i32) {
    %c0_i32 = arith.constant 0 : i32
    %c0_i32_0 = arith.constant 0 : i32
    %c0_i32_1 = arith.constant 0 : i32
    return %c0_i32, %c0_i32_0 : i32, i32
  }
  func.func @transform_6(%arg0: i32, %arg1: i32) -> (i32, i32) {
    %c0_i32 = arith.constant 0 : i32
    %c0_i32_0 = arith.constant 0 : i32
    %c0_i32_1 = arith.constant 0 : i32
    return %c0_i32, %c0_i32_0 : i32, i32
  }
  func.func @transform_7(%arg0: i32, %arg1: i32) -> (i32, i32, i32) {
    %c0_i32 = arith.constant 0 : i32
    %c0_i32_0 = arith.constant 0 : i32
    return %arg0, %arg1, %c0_i32 : i32, i32, i32
  }
  func.func @transform_8(%arg0: i32, %arg1: i32) -> (i32, i32, i32, i32) {
    %c0_i32 = arith.constant 0 : i32
    %c0_i32_0 = arith.constant 0 : i32
    %c0_i32_1 = arith.constant 0 : i32
    return %arg0, %arg1, %c0_i32, %c0_i32_0 : i32, i32, i32, i32
  }
}

module attributes {stable_mosaic.version = 11 : i64} {
  func.func @_last_layer_kernel(%arg0: i32, %arg1: i32, %arg2: memref<1x16x8xbf16, #tpu.memory_space<vmem>>, %arg3: memref<1x16x3xf32, #tpu.memory_space<vmem>>, %arg4: memref<1x8xf32, #tpu.memory_space<vmem>>, %arg5: memref<1x8xf32, #tpu.memory_space<vmem>>, %arg6: memref<8x3xbf16, #tpu.memory_space<vmem>>, %arg7: memref<3x3xf32, #tpu.memory_space<vmem>>, %arg8: memref<1x3xf32, #tpu.memory_space<vmem>>, %arg9: memref<1x16x3xf32, #tpu.memory_space<vmem>>) attributes {dimension_semantics = [#tpu.dimension_semantics<parallel>, #tpu.dimension_semantics<parallel>], iteration_bounds = array<i64: 2, 2>, scalar_prefetch = 0 : i64, scratch_operands = 0 : i64, tpu.core_type = #tpu.core_type<tc>, window_params = [{transform_indices = @transform_0, window_bounds = array<i64: 1, 16, 8>}, {transform_indices = @transform_1, window_bounds = array<i64: 1, 16, 3>}, {pipeline_mode = #tpu.pipeline_mode<synchronous>, transform_indices = @transform_2, window_bounds = array<i64: 1, 8>}, {pipeline_mode = #tpu.pipeline_mode<synchronous>, transform_indices = @transform_3, window_bounds = array<i64: 1, 8>}, {pipeline_mode = #tpu.pipeline_mode<synchronous>, transform_indices = @transform_4, window_bounds = array<i64: 8, 3>}, {pipeline_mode = #tpu.pipeline_mode<synchronous>, transform_indices = @transform_5, window_bounds = array<i64: 3, 3>}, {pipeline_mode = #tpu.pipeline_mode<synchronous>, transform_indices = @transform_6, window_bounds = array<i64: 1, 3>}, {transform_indices = @transform_7, window_bounds = array<i64: 1, 16, 3>}]} {
    %c0 = arith.constant 0 : index
    %c0_0 = arith.constant 0 : index
    %c0_1 = arith.constant 0 : index
    %0 = vector.load %arg2[%c0, %c0_0, %c0_1] : memref<1x16x8xbf16, #tpu.memory_space<vmem>>, vector<1x16x8xbf16>
    %1 = vector.shape_cast %0 : vector<1x16x8xbf16> to vector<16x8xbf16>
    %2 = arith.extf %1 : vector<16x8xbf16> to vector<16x8xf32>
    %c0_2 = arith.constant 0 : index
    %c0_3 = arith.constant 0 : index
    %3 = vector.load %arg4[%c0_2, %c0_3] : memref<1x8xf32, #tpu.memory_space<vmem>>, vector<1x8xf32>
    %4 = vector.broadcast %3 : vector<1x8xf32> to vector<16x8xf32>
    %5 = arith.mulf %2, %4 : vector<16x8xf32>
    %c0_4 = arith.constant 0 : index
    %c0_5 = arith.constant 0 : index
    %6 = vector.load %arg5[%c0_4, %c0_5] : memref<1x8xf32, #tpu.memory_space<vmem>>, vector<1x8xf32>
    %7 = vector.broadcast %6 : vector<1x8xf32> to vector<16x8xf32>
    %8 = arith.addf %5, %7 : vector<16x8xf32>
    %cst = arith.constant 0.000000e+00 : f32
    %9 = vector.broadcast %cst : f32 to vector<16x8xf32>
    %10 = arith.maximumf %8, %9 : vector<16x8xf32>
    %11 = arith.truncf %10 : vector<16x8xf32> to vector<16x8xbf16>
    %c0_6 = arith.constant 0 : index
    %c0_7 = arith.constant 0 : index
    %12 = vector.load %arg6[%c0_6, %c0_7] : memref<8x3xbf16, #tpu.memory_space<vmem>>, vector<8x3xbf16>
    %cst_8 = arith.constant dense<0.000000e+00> : vector<16x3xf32>
    %13 = tpu.matmul %11, %12, %cst_8 {dimension_numbers = #tpu.dot_dimension_numbers<[1], [0], [0], [1], [0, 0, 1, 1], [], []>} : vector<16x8xbf16>, vector<8x3xbf16>, vector<16x3xf32> -> vector<16x3xf32>
    %c0_9 = arith.constant 0 : index
    %c0_10 = arith.constant 0 : index
    %c0_11 = arith.constant 0 : index
    %14 = vector.load %arg3[%c0_9, %c0_10, %c0_11] : memref<1x16x3xf32, #tpu.memory_space<vmem>>, vector<1x16x3xf32>
    %15 = vector.shape_cast %14 : vector<1x16x3xf32> to vector<16x3xf32>
    %c0_12 = arith.constant 0 : index
    %c0_13 = arith.constant 0 : index
    %16 = vector.load %arg7[%c0_12, %c0_13] : memref<3x3xf32, #tpu.memory_space<vmem>>, vector<3x3xf32>
    %17 = vector.extract_strided_slice %15 {offsets = [0, 0], sizes = [16, 1], strides = [1, 1]} : vector<16x3xf32> to vector<16x1xf32>
    %18 = vector.extract_strided_slice %16 {offsets = [0, 0], sizes = [1, 3], strides = [1, 1]} : vector<3x3xf32> to vector<1x3xf32>
    %19 = vector.broadcast %17 : vector<16x1xf32> to vector<16x3xf32>
    %20 = vector.broadcast %18 : vector<1x3xf32> to vector<16x3xf32>
    %21 = arith.mulf %19, %20 : vector<16x3xf32>
    %22 = vector.extract_strided_slice %15 {offsets = [0, 1], sizes = [16, 1], strides = [1, 1]} : vector<16x3xf32> to vector<16x1xf32>
    %23 = vector.extract_strided_slice %16 {offsets = [1, 0], sizes = [1, 3], strides = [1, 1]} : vector<3x3xf32> to vector<1x3xf32>
    %24 = vector.broadcast %22 : vector<16x1xf32> to vector<16x3xf32>
    %25 = vector.broadcast %23 : vector<1x3xf32> to vector<16x3xf32>
    %26 = arith.mulf %24, %25 : vector<16x3xf32>
    %27 = arith.addf %21, %26 : vector<16x3xf32>
    %28 = vector.extract_strided_slice %15 {offsets = [0, 2], sizes = [16, 1], strides = [1, 1]} : vector<16x3xf32> to vector<16x1xf32>
    %29 = vector.extract_strided_slice %16 {offsets = [2, 0], sizes = [1, 3], strides = [1, 1]} : vector<3x3xf32> to vector<1x3xf32>
    %30 = vector.broadcast %28 : vector<16x1xf32> to vector<16x3xf32>
    %31 = vector.broadcast %29 : vector<1x3xf32> to vector<16x3xf32>
    %32 = arith.mulf %30, %31 : vector<16x3xf32>
    %33 = arith.addf %27, %32 : vector<16x3xf32>
    %34 = arith.addf %13, %33 : vector<16x3xf32>
    %c0_14 = arith.constant 0 : index
    %c0_15 = arith.constant 0 : index
    %35 = vector.load %arg8[%c0_14, %c0_15] : memref<1x3xf32, #tpu.memory_space<vmem>>, vector<1x3xf32>
    %36 = vector.broadcast %35 : vector<1x3xf32> to vector<16x3xf32>
    %37 = arith.addf %34, %36 : vector<16x3xf32>
    %38 = math.tanh %37 : vector<16x3xf32>
    %c0_16 = arith.constant 0 : index
    %c0_17 = arith.constant 0 : index
    %c0_18 = arith.constant 0 : index
    %39 = vector.load %arg9[%c0_16, %c0_17, %c0_18] : memref<1x16x3xf32, #tpu.memory_space<vmem>>, vector<1x16x3xf32>
    %40 = vector.shape_cast %39 : vector<1x16x3xf32> to vector<16x3xf32>
    %41 = vector.shape_cast %38 : vector<16x3xf32> to vector<1x16x3xf32>
    tpu.vector_store %arg9[%c0_16, %c0_17, %c0_18], %41 {strides = array<i32>} : memref<1x16x3xf32, #tpu.memory_space<vmem>>, vector<1x16x3xf32>,
    return
  }
  func.func @transform_0(%arg0: i32, %arg1: i32) -> (i32, i32, i32) {
    %c0_i32 = arith.constant 0 : i32
    %c0_i32_0 = arith.constant 0 : i32
    return %arg0, %arg1, %c0_i32 : i32, i32, i32
  }
  func.func @transform_1(%arg0: i32, %arg1: i32) -> (i32, i32, i32) {
    %c0_i32 = arith.constant 0 : i32
    %c0_i32_0 = arith.constant 0 : i32
    return %arg0, %arg1, %c0_i32 : i32, i32, i32
  }
  func.func @transform_2(%arg0: i32, %arg1: i32) -> (i32, i32) {
    %c0_i32 = arith.constant 0 : i32
    %c0_i32_0 = arith.constant 0 : i32
    %c0_i32_1 = arith.constant 0 : i32
    return %c0_i32, %c0_i32_0 : i32, i32
  }
  func.func @transform_3(%arg0: i32, %arg1: i32) -> (i32, i32) {
    %c0_i32 = arith.constant 0 : i32
    %c0_i32_0 = arith.constant 0 : i32
    %c0_i32_1 = arith.constant 0 : i32
    return %c0_i32, %c0_i32_0 : i32, i32
  }
  func.func @transform_4(%arg0: i32, %arg1: i32) -> (i32, i32) {
    %c0_i32 = arith.constant 0 : i32
    %c0_i32_0 = arith.constant 0 : i32
    %c0_i32_1 = arith.constant 0 : i32
    return %c0_i32, %c0_i32_0 : i32, i32
  }
  func.func @transform_5(%arg0: i32, %arg1: i32) -> (i32, i32) {
    %c0_i32 = arith.constant 0 : i32
    %c0_i32_0 = arith.constant 0 : i32
    %c0_i32_1 = arith.constant 0 : i32
    return %c0_i32, %c0_i32_0 : i32, i32
  }
  func.func @transform_6(%arg0: i32, %arg1: i32) -> (i32, i32) {
    %c0_i32 = arith.constant 0 : i32
    %c0_i32_0 = arith.constant 0 : i32
    %c0_i32_1 = arith.constant 0 : i32
    return %c0_i32, %c0_i32_0 : i32, i32
  }
  func.func @transform_7(%arg0: i32, %arg1: i32) -> (i32, i32, i32) {
    %c0_i32 = arith.constant 0 : i32
    %c0_i32_0 = arith.constant 0 : i32
    return %arg0, %arg1, %c0_i32 : i32, i32, i32
  }
}

</mosaic_0001>

<bundles_post_ra>
// kernel: pointgen_forward.4
= control target key start
LH: loop header
LB: loop body
LE: loop exit
PB: predicated region body
PF: predicated region fallthrough
CT: control target
= control target key end

     0   :  { %s801_s21 = smov 0   ;;  %s803_s22 = smov 0   ;;  %s889_s0 = inlined_call_operand.vmem [shape: f32[2,1,32], index: 0, kind: input, shape index: {}]   ;;  %s890_s1 = inlined_call_operand.vmem [shape: f32[2,32,3], index: 1, kind: input, shape index: {}]   ;;  %s891_s2 = inlined_call_operand.vmem [shape: bf16[32,32], index: 2, kind: input, shape index: {}]   ;;  %s892_s3 = inlined_call_operand.vmem [shape: f32[3,32], index: 3, kind: input, shape index: {}]   ;;  %s893_s4 = inlined_call_operand.vmem [shape: f32[1,32], index: 4, kind: input, shape index: {}]   ;;  %s894_s5 = inlined_call_operand.vmem [shape: bf16[2,32,32], index: 5, kind: output, shape index: {0}]   ;;  %s895_s6 = inlined_call_operand.vmem [shape: f32[2,2,2,32], index: 6, kind: output, shape index: {1}]  }
   0x1   :  { %s805_s23 = smov 0   ;;  %s807_s24 = smov 0  }
   0x2   :  { %s809_s25 = smov 0  }
   0x3 LB: > { %s26_s26 = sadd.s32 1, %s751_s23  ;;  %s29_s27 = sadd.s32 1, %s755_s24  ;;  %s759_s25 = sphi %s809_s25, %s17_s25   ;;  %s755_s24 = sphi %s807_s24, %s899_s24   ;;  %s751_s23 = sphi %s805_s23, %s898_s23   ;;  %s747_s22 = sphi %s803_s22, %s897_s22   ;;  %s743_s21 = sphi %s801_s21, %s896_s21  }
   0x4   : > { %p27_p0 = scmp.ge.s32.totalorder %s26_s26, 2  ;;  %p640_p1 = scmp.ge.s32.totalorder %s759_s25, 1 }
   0x5   : > { %p246_p2 = scmp.lt.s32.totalorder %s759_s25, 5 }
   0x6   : > { %s901_s26 = smov (%p27_p0, %s26_s26), 0  ;;  %s903_s27 = smov (!%p27_p0, %s29_s27), %s755_s24 }
   0x7   : > { %p247_p3 = pnand %p640_p1, %p246_p2  ;;  %p31_p4 = scmp.ge.s32.totalorder %s903_s27, 2 }
   0x8   : > { %p295_p5 = scmp.lt.s32.totalorder (!%p247_p3), %s747_s22, 1  ;;  %s641_s8 = sshll.u32 (!%p247_p3), %s743_s21, 1 }
   0x9   : > { %s905_s27 = smov (%p31_p4, %s903_s27), 0  ;;  %250 = sbr.rel (%p247_p3) target bundleno = 242 (0xf2), region = 40 }
   0xa   : > { %p301_p6 = scmp.lt.s32.totalorder (!%p247_p3), %s641_s8, 3  ;;  %p320_p7 = scmp.lt.s32.totalorder (!%p247_p3), %s743_s21, 1 }
   0xe   : > { %v719_v0 = vld [vmem:[%s891_s2 + $0x8] sm:$0xff]   ;;  %v761_v1 = vmov 0.0   ;;  %v720_v2 = vld [vmem:[%s891_s2] sm:$0xff]   ;;  %vm762_vm0 = vmmov 0   ;;  %v763_v3 = vmov 1   ;;  %s907_s22 = smov (!%p295_p5, %s747_s22), 1  ;;  %v402_v10 = vlaneseq }
   0xf   : > { %662 = vmatprep.subr.bf16.mxu0 %v761_v1  ;;  %666 = vmatprep.mubr.msk.bf16.mxu0 %vm762_vm0, %v761_v1  ;;  %v764_v4 = vmov 0   ;;  %s297_s11 = scalar_lea.vmem %s889_s0, %s907_s22  ;;  %vm345_vm1 = vcmask 261120   ;;  %s642_s12 = sshll.u32 %s907_s22, 2  ;;  %v765_v9 = vmov 2   ;;  %v391_v16 = vld [vmem:[%s892_s3] sm:$0x7] }
  0x10   : > { %663 = vmatpush3.bf16.msra.mxu0 %v719_v0  ;;  %716 = vset.pattern.permute.xlu1 %v763_v3  ;;  %v327_v5 = vld [vmem:[%s297_s11] sm:$0x1]  ;;  %s909_s8 = smov (!%p301_p6, %s641_s8), 3  ;;  %v403_v11 = vshrl.u32 %v402_v10, 7  ;;  %vm463_vm2 = vcmask 257024   ;;  %s911_s21 = smov (!%p320_p7, %s743_s21), 1 }
  0x11   : > { %664 = vmatprep.subr.bf16.mxu0 %v761_v1  ;;  %715 = vset.pattern.permute.xlu0 %v764_v4  ;;  %v328_v6 = vpack.c.bf16 %v327_v5, %v327_v5  ;;  %s848_s13 = sadd.s32 %s642_s12, %s909_s8  ;;  %v652_v37 = vld [vmem:[%s893_s4] ss:$0 sm:$0xff]  ;;  %s647_s9 = sshll.u32 %s907_s22, 1  ;;  %vm486_vm3 = vcmask 1040384   ;;  %vm488_vm4 = vcmask 254976  }
  0x12   : > { %s643_s14 = sshll.u32 %s848_s13, 3  ;;  %v418_v14 = vsub.s32 1, %v403_v11  ;;  %v404_v15 = vsub.s32 0, %v403_v11  ;;  %v434_v19 = vsub.s32 2, %v403_v11  ;;  %s646_s29 = sshll.u32 %s848_s13, 2 }
  0x13   : > { %s306_s17 = scalar_lea.vmem %s890_s1, %s643_s14  ;;  %s316_s8 = scalar_lea.vmem %s894_s5, %s646_s29 }
  0x14   : > { %665 = vmatpush3.bf16.msra.mxu0 %v720_v2  ;;  %v389_v7 = vld [vmem:[%s306_s17] sm:$0xff]  ;;  %v390_v8 = vld [vmem:[%s306_s17 + $0x8] sm:$0xff]  ;;  %v419_v20 = vrot.slane %v391_v16, %v418_v14  ;;  %v405_v21 = vrot.slane %v391_v16, %v404_v15  ;;  %v435_v22 = vrot.slane %v391_v16, %v434_v19  ;;  %s323_s10 = sadd.s32 %s647_s9, %s911_s21 }
  0x15   : > { %409 = vperm.xlu1 %716, %v389_v7   ;;  %394 = vperm.xlu0 %715, %v389_v7   ;;  %s648_s11 = sshll.u32 %s323_s10, 1 }
  0x16   : > { %s325_s14 = scalar_lea.vmem %s895_s6, %s648_s11 }
  0x17   : > { %667 = vmatmul.mubr.msk.bf16.vlgmr.msra.gmra.mxu0 %vm345_vm1, %v328_v6 }
  0x19   : > { %413 = vperm.xlu1 %716, %v390_v8   ;;  %399 = vperm.xlu0 %715, %v390_v8  }
  0x1d   : > { %718 = vset.pattern.permute.xlu1 %v765_v9  ;;  %717 = vset.pattern.permute.xlu0 %v765_v9 }
  0x1e   : > { %429 = vperm.xlu1 %718, %v390_v8   ;;  %425 = vperm.xlu0 %717, %v389_v7  }
  0x90   : > { %v410_v12 = vpop.permute.xlu1 %409  ;;  %v395_v13 = vpop.permute.xlu0 %394 }
  0x91   : > { %v420_v23 = vmul.f32 %v419_v20, %v410_v12  ;;  %v406_v24 = vmul.f32 %v405_v21, %v395_v13 }
  0x93   : > { %v422_v29 = vadd.f32 %v420_v23, %v406_v24 }
  0x94   : > { %v414_v17 = vpop.permute.xlu1 %413  ;;  %v400_v18 = vpop.permute.xlu0 %399 }
  0x95   : > { %v421_v25 = vmul.f32 %v419_v20, %v414_v17  ;;  %v407_v26 = vmul.f32 %v405_v21, %v400_v18 }
  0x97   : > { %v423_v30 = vadd.f32 %v421_v25, %v407_v26 }
  0x99   : > { %v430_v27 = vpop.permute.xlu1 %429  ;;  %v426_v28 = vpop.permute.xlu0 %425 }
  0x9a   : > { %v437_v31 = vmul.f32 %v435_v22, %v430_v27  ;;  %v436_v32 = vmul.f32 %v435_v22, %v426_v28 }
  0x9c   : > { %v439_v34 = vadd.f32 %v437_v31, %v423_v30  ;;  %v438_v35 = vadd.f32 %v436_v32, %v422_v29 }
  0xd7   : > { %v383_v33 = vpop.f32.mrf.mxu0 }
  0xd8   : > { %v443_v36 = vrot.slane %v383_v33, %v404_v15 }
  0xd9   : > { %v668_v38 = vpop.f32.mrf.mxu0 }
  0xda   : > { %v444_v39 = vadd.f32 %v443_v36, %v438_v35  ;;  %v445_v40 = vadd.f32 %v443_v36, %v439_v34 }
  0xdb   : > { %v386_v41 = vpop.f32.mrf.mxu0 }
  0xdc   : > { %v453_v42 = vadd.f32 %v652_v37, %v444_v39  ;;  %v454_v43 = vadd.f32 %v652_v37, %v445_v40 }
  0xdd   : > { %v669_v44 = vpop.f32.mrf.mxu0 }
  0xde   : > { %v657_v45 = vpack.c.bf16 %v453_v42, %v453_v42  ;;  %v658_v46 = vpack.c.bf16 %v454_v43, %v454_v43  ;;  %v466_v47 = vsel %vm345_vm1, %v453_v42, 0.0  ;;  %v467_v48 = vsel %vm345_vm1, %v454_v43, 0.0 }
  0xdf   : > { %v468_v49 = vadd.f32 %v467_v48, %v466_v47  ;;  %v475_v50 = vmul.f32 %v453_v42, %v453_v42  ;;  %v476_v51 = vmul.f32 %v454_v43, %v454_v43 }
  0xe0   : > { %464 = vst.msk [vmem:[%s316_s8] sm:$0xf] %vm463_vm2, %v657_v45  ;;  %465 = vst.msk [vmem:[%s316_s8 + $0x4] sm:$0xf] %vm463_vm2, %v658_v46 }
  0xe1   : > { %v469_v52 = vrot.slane %v468_v49, 4  ;;  %v477_v53 = vsel %vm345_vm1, %v475_v50, 0.0  ;;  %v478_v54 = vsel %vm345_vm1, %v476_v51, 0.0 }
  0xe2   : > { %v479_v55 = vadd.f32 %v478_v54, %v477_v53 }
  0xe3   : > { %v470_v56 = vadd.f32 %v469_v52, %v468_v49 }
  0xe4   : > { %v480_v57 = vrot.slane %v479_v55, 4 }
  0xe5   : > { %v471_v58 = vrot.slane %v470_v56, 2 }
  0xe6   : > { %v481_v59 = vadd.f32 %v480_v57, %v479_v55 }
  0xe7   : > { %v472_v60 = vadd.f32 %v471_v58, %v470_v56 }
  0xe8   : > { %v482_v61 = vrot.slane %v481_v59, 2 }
  0xe9   : > { %v473_v62 = vrot.slane %v472_v60, 1 }
  0xea   : > { %v483_v63 = vadd.f32 %v482_v61, %v481_v59 }
  0xeb   : > { %v474_v1 = vadd.f32 %v473_v62, %v472_v60 }
  0xec   : > { %v484_v0 = vrot.slane %v483_v63, 1 }
  0xee   : > { %v485_v2 = vadd.f32 %v484_v0, %v483_v63 }
  0xf0   : > { %v487_v3 = vsel %vm486_vm3, %v474_v1, %v485_v2 }
  0xf1   : > { %489 = vst.msk [vmem:[%s325_s14] sm:$0x3] %vm488_vm4, %v487_v3 }
  0xf2 PF: > { %s17_s25 = sadd.s32 1, %s759_s25   ;;  %s896_s21 = smov %s751_s23 }
  0xf3   : > { %p14_p8 = scmp.ge.s32.totalorder %s17_s25, 6   ;;  %s897_s22 = smov %s755_s24 }
  0xf4   : > { %s898_s23 = smov %s901_s26  ;;  %s899_s24 = smov %s905_s27 }
  0xf5   :  { %16 = sbr.rel (!%p14_p8) target bundleno = 3 (0x3), region = 85 }

// kernel: pointgen_forward.5
= control target key start
LH: loop header
LB: loop body
LE: loop exit
PB: predicated region body
PF: predicated region fallthrough
CT: control target
= control target key end

     0   :  { %s924_s27 = smov 0   ;;  %s926_s28 = smov 0   ;;  %s1018_s0 = inlined_call_operand.vmem [shape: bf16[2,32,32], index: 0, kind: input, shape index: {}]   ;;  %s1019_s1 = inlined_call_operand.vmem [shape: f32[2,32,3], index: 1, kind: input, shape index: {}]   ;;  %s1020_s2 = inlined_call_operand.vmem [shape: f32[1,32], index: 2, kind: input, shape index: {}]   ;;  %s1021_s3 = inlined_call_operand.vmem [shape: f32[1,32], index: 3, kind: input, shape index: {}]   ;;  %s1022_s4 = inlined_call_operand.vmem [shape: bf16[32,16], index: 4, kind: input, shape index: {}]   ;;  %s1023_s5 = inlined_call_operand.vmem [shape: f32[3,16], index: 5, kind: input, shape index: {}]   ;;  %s1024_s6 = inlined_call_operand.vmem [shape: f32[1,16], index: 6, kind: input, shape index: {}]   ;;  %s1025_s7 = inlined_call_operand.vmem [shape: bf16[2,32,16], index: 7, kind: output, shape index: {0}]   ;;  %s1026_s8 = inlined_call_operand.vmem [shape: f32[2,2,2,16], index: 8, kind: output, shape index: {1}]  }
   0x1   :  { %s928_s29 = smov 0   ;;  %s930_s30 = smov 0  }
   0x2   :  { %s932_s9 = smov 0  }
   0x3 LB: > { %s28_s10 = sadd.s32 1, %s864_s29  ;;  %s31_s11 = sadd.s32 1, %s868_s30  ;;  %s872_s9 = sphi %s932_s9, %s19_s9   ;;  %s868_s30 = sphi %s930_s30, %s1030_s30   ;;  %s864_s29 = sphi %s928_s29, %s1029_s29   ;;  %s860_s28 = sphi %s926_s28, %s1028_s28   ;;  %s856_s27 = sphi %s924_s27, %s1027_s27  }
   0x4   : > { %p29_p0 = scmp.ge.s32.totalorder %s28_s10, 2  ;;  %p744_p1 = scmp.ge.s32.totalorder %s872_s9, 1 }
   0x5   : > { %p305_p2 = scmp.lt.s32.totalorder %s872_s9, 5 }
   0x6   : > { %s1032_s10 = smov (%p29_p0, %s28_s10), 0  ;;  %s1034_s11 = smov (!%p29_p0, %s31_s11), %s868_s30 }
   0x7   : > { %p306_p3 = pnand %p744_p1, %p305_p2  ;;  %p33_p4 = scmp.ge.s32.totalorder %s1034_s11, 2 }
   0x8   : > { %s745_s16 = sshll.u32 (!%p306_p3), %s856_s27, 1  ;;  %p365_p5 = scmp.lt.s32.totalorder (!%p306_p3), %s860_s28, 1 }
   0x9   : > { %s1036_s11 = smov (%p33_p4, %s1034_s11), 0  ;;  %309 = sbr.rel (%p306_p3) target bundleno = 251 (0xfb), region = 48 }
   0xa   : > { %p367_p6 = scmp.lt.s32.totalorder (!%p306_p3), %s745_s16, 3  ;;  %p396_p7 = scmp.lt.s32.totalorder (!%p306_p3), %s856_s27, 1 }
   0xe   : > { %v832_v0 = vld [vmem:[%s1022_s4 + $0x8] sm:$0xff]   ;;  %v874_v1 = vmov 0.0   ;;  %v833_v2 = vld [vmem:[%s1022_s4] sm:$0xff]   ;;  %vm875_vm0 = vmmov 0   ;;  %s1038_s28 = smov (!%p365_p5, %s860_s28), 1  ;;  %v876_v3 = vmov 1   ;;  %v445_v20 = vlaneseq }
   0xf   : > { %775 = vmatprep.subr.bf16.mxu0 %v874_v1  ;;  %779 = vmatprep.mubr.msk.bf16.mxu0 %vm875_vm0, %v874_v1  ;;  %v877_v4 = vmov 0   ;;  %s1040_s16 = smov (!%p367_p6, %s745_s16), 3  ;;  %s746_s17 = sshll.u32 %s1038_s28, 2  ;;  %v756_v6 = vld [vmem:[%s1020_s2] ss:$0 sm:$0xff]  ;;  %vm495_vm1 = vcmask 261120  }
  0x10   : > { %776 = vmatpush3.bf16.msra.mxu0 %v832_v0  ;;  %829 = vset.pattern.permute.xlu1 %v876_v3  ;;  %s966_s18 = sadd.s32 %s746_s17, %s1040_s16  ;;  %v757_v10 = vld [vmem:[%s1021_s3] ss:$0 sm:$0xff]  ;;  %v878_v19 = vmov 2   ;;  %v446_v21 = vshrl.u32 %v445_v20, 7  ;;  %vm557_vm2 = vcmask 125952   ;;  %vm560_vm3 = vcmask 130048  }
  0x11   : > { %777 = vmatprep.subr.bf16.mxu0 %v874_v1  ;;  %828 = vset.pattern.permute.xlu0 %v877_v4  ;;  %s747_s19 = sshll.u32 %s966_s18, 2  ;;  %s750_s20 = sshll.u32 %s966_s18, 3  ;;  %v434_v25 = vld [vmem:[%s1023_s5] sm:$0x7]  ;;  %vm581_vm4 = vcmask 1040384   ;;  %vm583_vm5 = vcmask 123904  }
  0x12   : > { %s372_s23 = scalar_lea.vmem %s1018_s0, %s747_s19  ;;  %s382_s26 = scalar_lea.vmem %s1019_s1, %s750_s20  ;;  %v461_v23 = vsub.s32 1, %v446_v21  ;;  %v447_v24 = vsub.s32 0, %v446_v21  ;;  %v477_v30 = vsub.s32 2, %v446_v21  ;;  %v761_v45 = vld [vmem:[%s1024_s6] ss:$0 sm:$0xff] }
  0x13   : > { %v769_v5 = vld [vmem:[%s372_s23] sm:$0xff]   ;;  %v433_v11 = vld [vmem:[%s382_s26 + $0x8] sm:$0xff]  ;;  %s392_s24 = scalar_lea.vmem %s1025_s7, %s747_s19  ;;  %s1042_s27 = smov (!%p396_p7, %s856_s27), 1 }
  0x14   : > { %778 = vmatpush3.bf16.msra.mxu0 %v833_v2  ;;  %v432_v7 = vld [vmem:[%s382_s26] sm:$0xff]  ;;  %v770_v8 = vunpack.c.l.bf16 %v769_v5  ;;  %v771_v9 = vunpack.c.h.bf16 %v769_v5  ;;  %v462_v28 = vrot.slane %v434_v25, %v461_v23  ;;  %v448_v29 = vrot.slane %v434_v25, %v447_v24  ;;  %s754_s18 = sshll.u32 %s1038_s28, 1 }
  0x15   : > { %452 = vperm.xlu1 %829, %v432_v7   ;;  %437 = vperm.xlu0 %828, %v432_v7   ;;  %v478_v34 = vrot.slane %v434_v25, %v477_v30  ;;  %s399_s19 = sadd.s32 %s754_s18, %s1042_s27 }
  0x16   : > { %v414_v12 = vmul.f32 %v770_v8, %v756_v6  ;;  %v415_v13 = vmul.f32 %v771_v9, %v756_v6  ;;  %s755_s25 = sshll.u32 %s399_s19, 1 }
  0x17   : > { %s401_s13 = scalar_lea.vmem %s1026_s8, %s755_s25 }
  0x18   : > { %v423_v14 = vadd.f32 %v757_v10, %v414_v12  ;;  %v424_v15 = vadd.f32 %v757_v10, %v415_v13 }
  0x19   : > { %456 = vperm.xlu1 %829, %v433_v11   ;;  %442 = vperm.xlu0 %828, %v433_v11  }
  0x1a   : > { %v425_v16 = vmax.f32 %v423_v14, 0.0  ;;  %v426_v17 = vmax.f32 %v424_v15, 0.0 }
  0x1c   : > { %v427_v18 = vpack.c.bf16 %v426_v17, %v425_v16 }
  0x1d   : > { %831 = vset.pattern.permute.xlu1 %v878_v19  ;;  %830 = vset.pattern.permute.xlu0 %v878_v19 }
  0x1e   : > { %472 = vperm.xlu1 %831, %v433_v11   ;;  %468 = vperm.xlu0 %830, %v432_v7  }
  0x1f   : > { %780 = vmatmul.mubr.msk.bf16.vlgmr.msra.gmra.mxu0 %vm495_vm1, %v427_v18 }
  0x90   : > { %v438_v22 = vpop.permute.xlu0 %437  ;;  %v453_v26 = vpop.permute.xlu1 %452 }
  0x91   : > { %v463_v32 = vmul.f32 %v462_v28, %v453_v26  ;;  %v449_v33 = vmul.f32 %v448_v29, %v438_v22 }
  0x93   : > { %v465_v36 = vadd.f32 %v463_v32, %v449_v33 }
  0x94   : > { %v443_v27 = vpop.permute.xlu0 %442  ;;  %v457_v31 = vpop.permute.xlu1 %456 }
  0x95   : > { %v464_v37 = vmul.f32 %v462_v28, %v457_v31  ;;  %v450_v38 = vmul.f32 %v448_v29, %v443_v27 }
  0x97   : > { %v466_v41 = vadd.f32 %v464_v37, %v450_v38 }
  0x99   : > { %v469_v35 = vpop.permute.xlu0 %468  ;;  %v473_v40 = vpop.permute.xlu1 %472 }
  0x9a   : > { %v479_v39 = vmul.f32 %v478_v34, %v469_v35  ;;  %v480_v42 = vmul.f32 %v478_v34, %v473_v40 }
  0x9c   : > { %v481_v43 = vadd.f32 %v479_v39, %v465_v36  ;;  %v482_v49 = vadd.f32 %v480_v42, %v466_v41 }
  0xdf   : > { %v533_v44 = vpop.f32.mrf.mxu0 }
  0xe0   : > { %v534_v46 = vadd.f32 %v533_v44, %v481_v43 }
  0xe1   : > { %v781_v47 = vpop.f32.mrf.mxu0 }
  0xe2   : > { %v547_v48 = vadd.f32 %v761_v45, %v534_v46 }
  0xe3   : > { %v536_v50 = vpop.f32.mrf.mxu0 }
  0xe4   : > { %v766_v51 = vpack.c.bf16 %v547_v48, %v547_v48  ;;  %v537_v52 = vadd.f32 %v536_v50, %v482_v49  ;;  %v570_v54 = vmul.f32 %v547_v48, %v547_v48  ;;  %v561_v56 = vsel %vm560_vm3, %v547_v48, 0.0 }
  0xe5   : > { %v782_v53 = vpop.f32.mrf.mxu0 }
  0xe6   : > { %558 = vst.msk [vmem:[%s392_s24] sm:$0xf] %vm557_vm2, %v766_v51  ;;  %v548_v55 = vadd.f32 %v761_v45, %v537_v52  ;;  %v572_v61 = vsel %vm560_vm3, %v570_v54, 0.0 }
  0xe8   : > { %v767_v57 = vpack.c.bf16 %v548_v55, %v548_v55  ;;  %v562_v58 = vsel %vm560_vm3, %v548_v55, 0.0  ;;  %v571_v59 = vmul.f32 %v548_v55, %v548_v55 }
  0xe9   : > { %v563_v60 = vadd.f32 %v562_v58, %v561_v56 }
  0xea   : > { %559 = vst.msk [vmem:[%s392_s24 + $0x4] sm:$0xf] %vm557_vm2, %v767_v57  ;;  %v573_v62 = vsel %vm560_vm3, %v571_v59, 0.0 }
  0xeb   : > { %v564_v63 = vrot.slane %v563_v60, 4  ;;  %v574_v0 = vadd.f32 %v573_v62, %v572_v61 }
  0xed   : > { %v565_v1 = vadd.f32 %v564_v63, %v563_v60  ;;  %v575_v2 = vrot.slane %v574_v0, 4 }
  0xef   : > { %v566_v3 = vrot.slane %v565_v1, 2  ;;  %v576_v4 = vadd.f32 %v575_v2, %v574_v0 }
  0xf1   : > { %v567_v5 = vadd.f32 %v566_v3, %v565_v1  ;;  %v577_v6 = vrot.slane %v576_v4, 2 }
  0xf3   : > { %v568_v7 = vrot.slane %v567_v5, 1  ;;  %v578_v8 = vadd.f32 %v577_v6, %v576_v4 }
  0xf5   : > { %v579_v9 = vrot.slane %v578_v8, 1  ;;  %v569_v10 = vadd.f32 %v568_v7, %v567_v5 }
  0xf7   : > { %v580_v11 = vadd.f32 %v579_v9, %v578_v8 }
  0xf9   : > { %v582_v12 = vsel %vm581_vm4, %v569_v10, %v580_v11 }
  0xfa   : > { %584 = vst.msk [vmem:[%s401_s13] sm:$0x3] %vm583_vm5, %v582_v12 }
  0xfb PF: > { %s19_s9 = sadd.s32 1, %s872_s9   ;;  %s1027_s27 = smov %s864_s29 }
  0xfc   : > { %p16_p8 = scmp.ge.s32.totalorder %s19_s9, 6   ;;  %s1028_s28 = smov %s868_s30 }
  0xfd   : > { %s1029_s29 = smov %s1032_s10  ;;  %s1030_s30 = smov %s1036_s11 }
  0xfe   :  { %18 = sbr.rel (!%p16_p8) target bundleno = 3 (0x3), region = 93 }

// kernel: pointgen_forward.6
= control target key start
LH: loop header
LB: loop body
LE: loop exit
PB: predicated region body
PF: predicated region fallthrough
CT: control target
= control target key end

     0   :  { %s911_s27 = smov 0   ;;  %s913_s28 = smov 0   ;;  %s1002_s0 = inlined_call_operand.vmem [shape: bf16[2,32,16], index: 0, kind: input, shape index: {}]   ;;  %s1003_s1 = inlined_call_operand.vmem [shape: f32[2,32,3], index: 1, kind: input, shape index: {}]   ;;  %s1004_s2 = inlined_call_operand.vmem [shape: f32[1,16], index: 2, kind: input, shape index: {}]   ;;  %s1005_s3 = inlined_call_operand.vmem [shape: f32[1,16], index: 3, kind: input, shape index: {}]   ;;  %s1006_s4 = inlined_call_operand.vmem [shape: bf16[16,8], index: 4, kind: input, shape index: {}]   ;;  %s1007_s5 = inlined_call_operand.vmem [shape: f32[3,8], index: 5, kind: input, shape index: {}]   ;;  %s1008_s6 = inlined_call_operand.vmem [shape: f32[1,8], index: 6, kind: input, shape index: {}]   ;;  %s1009_s7 = inlined_call_operand.vmem [shape: bf16[2,32,8], index: 7, kind: output, shape index: {0}]   ;;  %s1010_s8 = inlined_call_operand.vmem [shape: f32[2,2,2,8], index: 8, kind: output, shape index: {1}]  }
   0x1   :  { %s915_s29 = smov 0   ;;  %s917_s30 = smov 0  }
   0x2   :  { %s919_s9 = smov 0  }
   0x3 LB: > { %s28_s10 = sadd.s32 1, %s851_s29  ;;  %s31_s11 = sadd.s32 1, %s855_s30  ;;  %s859_s9 = sphi %s919_s9, %s19_s9   ;;  %s855_s30 = sphi %s917_s30, %s1014_s30   ;;  %s851_s29 = sphi %s915_s29, %s1013_s29   ;;  %s847_s28 = sphi %s913_s28, %s1012_s28   ;;  %s843_s27 = sphi %s911_s27, %s1011_s27  }
   0x4   : > { %p29_p0 = scmp.ge.s32.totalorder %s28_s10, 2  ;;  %p736_p1 = scmp.ge.s32.totalorder %s859_s9, 1 }
   0x5   : > { %p305_p2 = scmp.lt.s32.totalorder %s859_s9, 5 }
   0x6   : > { %s1016_s10 = smov (%p29_p0, %s28_s10), 0  ;;  %s1018_s11 = smov (!%p29_p0, %s31_s11), %s855_s30 }
   0x7   : > { %p306_p3 = pnand %p736_p1, %p305_p2  ;;  %p33_p4 = scmp.ge.s32.totalorder %s1018_s11, 2 }
   0x8   : > { %s737_s14 = sshll.u32 (!%p306_p3), %s843_s27, 1  ;;  %p365_p5 = scmp.lt.s32.totalorder (!%p306_p3), %s847_s28, 1 }
   0x9   : > { %s1020_s11 = smov (%p33_p4, %s1018_s11), 0  ;;  %309 = sbr.rel (%p306_p3) target bundleno = 251 (0xfb), region = 48 }
   0xa   : > { %p367_p6 = scmp.lt.s32.totalorder (!%p306_p3), %s737_s14, 3  ;;  %p396_p7 = scmp.lt.s32.totalorder (!%p306_p3), %s843_s27, 1 }
   0xe   : > { %v820_v0 = vld [vmem:[%s1006_s4] sm:$0xff]   ;;  %v861_v1 = vmov 0.0   ;;  %vm862_vm0 = vmmov 0   ;;  %s1022_s28 = smov (!%p365_p5, %s847_s28), 1  ;;  %v863_v2 = vmov 1   ;;  %v864_v3 = vmov 0  }
   0xf   : > { %765 = vmatprep.subr.bf16.mxu0 %v861_v1  ;;  %767 = vmatprep.mubr.msk.bf16.mxu0 %vm862_vm0, %v861_v1  ;;  %s1024_s14 = smov (!%p367_p6, %s737_s14), 3  ;;  %s738_s15 = sshll.u32 %s1022_s28, 2  ;;  %v748_v5 = vld [vmem:[%s1004_s2] ss:$0 sm:$0xff]  ;;  %vm487_vm1 = vcmask 130048   ;;  %v865_v18 = vmov 2   ;;  %v443_v19 = vlaneseq }
  0x10   : > { %766 = vmatpush3.bf16.msra.mxu0 %v820_v0  ;;  %817 = vset.pattern.permute.xlu1 %v863_v2  ;;  %s950_s16 = sadd.s32 %s738_s15, %s1024_s14  ;;  %v749_v9 = vld [vmem:[%s1005_s3] ss:$0 sm:$0xff]  ;;  %vm549_vm2 = vcmask 60416   ;;  %vm552_vm3 = vcmask 64512   ;;  %s1026_s27 = smov (!%p396_p7, %s843_s27), 1  ;;  %vm573_vm4 = vcmask 1040384  }
  0x11   : > { %816 = vset.pattern.permute.xlu0 %v864_v3  ;;  %s739_s17 = sshll.u32 %s950_s16, 2  ;;  %s742_s18 = sshll.u32 %s950_s16, 3  ;;  %v444_v20 = vshrl.u32 %v443_v19, 7  ;;  %v432_v24 = vld [vmem:[%s1007_s5] sm:$0x7]  ;;  %vm575_vm5 = vcmask 58368  }
  0x12   : > { %s372_s21 = scalar_lea.vmem %s1002_s0, %s739_s17  ;;  %s382_s24 = scalar_lea.vmem %s1003_s1, %s742_s18  ;;  %v752_v44 = vld [vmem:[%s1008_s6] ss:$0 sm:$0xff] }
  0x13   : > { %v760_v4 = vld [vmem:[%s372_s21] sm:$0xff]   ;;  %v431_v10 = vld [vmem:[%s382_s24 + $0x8] sm:$0xff]  ;;  %v459_v22 = vsub.s32 1, %v444_v20  ;;  %v445_v23 = vsub.s32 0, %v444_v20  ;;  %v475_v29 = vsub.s32 2, %v444_v20  ;;  %s392_s22 = scalar_lea.vmem %s1009_s7, %s739_s17  ;;  %s746_s16 = sshll.u32 %s1022_s28, 1 }
  0x14   : > { %v430_v6 = vld [vmem:[%s382_s24] sm:$0xff]  ;;  %v761_v7 = vunpack.c.l.bf16 %v760_v4  ;;  %v762_v8 = vunpack.c.h.bf16 %v760_v4  ;;  %s399_s17 = sadd.s32 %s746_s16, %s1026_s27 }
  0x15   : > { %450 = vperm.xlu1 %817, %v430_v6   ;;  %435 = vperm.xlu0 %816, %v430_v6   ;;  %v460_v27 = vrot.slane %v432_v24, %v459_v22  ;;  %v446_v28 = vrot.slane %v432_v24, %v445_v23  ;;  %v476_v33 = vrot.slane %v432_v24, %v475_v29  ;;  %s747_s23 = sshll.u32 %s399_s17, 1 }
  0x16   : > { %v414_v11 = vmul.f32 %v761_v7, %v748_v5  ;;  %v415_v12 = vmul.f32 %v762_v8, %v748_v5  ;;  %s401_s26 = scalar_lea.vmem %s1010_s8, %s747_s23 }
  0x18   : > { %v423_v13 = vadd.f32 %v749_v9, %v414_v11  ;;  %v424_v14 = vadd.f32 %v749_v9, %v415_v12 }
  0x19   : > { %454 = vperm.xlu1 %817, %v431_v10   ;;  %440 = vperm.xlu0 %816, %v431_v10  }
  0x1a   : > { %v425_v15 = vmax.f32 %v423_v13, 0.0  ;;  %v426_v16 = vmax.f32 %v424_v14, 0.0 }
  0x1c   : > { %v427_v17 = vpack.c.bf16 %v426_v16, %v425_v15 }
  0x1d   : > { %819 = vset.pattern.permute.xlu1 %v865_v18  ;;  %818 = vset.pattern.permute.xlu0 %v865_v18 }
  0x1e   : > { %470 = vperm.xlu1 %819, %v431_v10   ;;  %466 = vperm.xlu0 %818, %v430_v6  }
  0x1f   : > { %768 = vmatmul.mubr.msk.bf16.vlgmr.msra.gmra.mxu0 %vm487_vm1, %v427_v17 }
  0x90   : > { %v436_v21 = vpop.permute.xlu0 %435  ;;  %v451_v25 = vpop.permute.xlu1 %450 }
  0x91   : > { %v461_v31 = vmul.f32 %v460_v27, %v451_v25  ;;  %v447_v32 = vmul.f32 %v446_v28, %v436_v21 }
  0x93   : > { %v463_v35 = vadd.f32 %v461_v31, %v447_v32 }
  0x94   : > { %v441_v26 = vpop.permute.xlu0 %440  ;;  %v455_v30 = vpop.permute.xlu1 %454 }
  0x95   : > { %v462_v36 = vmul.f32 %v460_v27, %v455_v30  ;;  %v448_v37 = vmul.f32 %v446_v28, %v441_v26 }
  0x97   : > { %v464_v40 = vadd.f32 %v462_v36, %v448_v37 }
  0x99   : > { %v467_v34 = vpop.permute.xlu0 %466  ;;  %v471_v39 = vpop.permute.xlu1 %470 }
  0x9a   : > { %v477_v38 = vmul.f32 %v476_v33, %v467_v34  ;;  %v478_v41 = vmul.f32 %v476_v33, %v471_v39 }
  0x9c   : > { %v479_v42 = vadd.f32 %v477_v38, %v463_v35  ;;  %v480_v48 = vadd.f32 %v478_v41, %v464_v40 }
  0xdf   : > { %v525_v43 = vpop.f32.mrf.mxu0 }
  0xe0   : > { %v526_v45 = vadd.f32 %v525_v43, %v479_v42 }
  0xe1   : > { %v769_v46 = vpop.f32.mrf.mxu0 }
  0xe2   : > { %v539_v47 = vadd.f32 %v752_v44, %v526_v45 }
  0xe3   : > { %v528_v49 = vpop.f32.mrf.mxu0 }
  0xe4   : > { %v757_v50 = vpack.c.bf16 %v539_v47, %v539_v47  ;;  %v529_v51 = vadd.f32 %v528_v49, %v480_v48  ;;  %v562_v53 = vmul.f32 %v539_v47, %v539_v47  ;;  %v553_v55 = vsel %vm552_vm3, %v539_v47, 0.0 }
  0xe5   : > { %v770_v52 = vpop.f32.mrf.mxu0 }
  0xe6   : > { %550 = vst.msk [vmem:[%s392_s22] sm:$0xf] %vm549_vm2, %v757_v50  ;;  %v540_v54 = vadd.f32 %v752_v44, %v529_v51  ;;  %v564_v60 = vsel %vm552_vm3, %v562_v53, 0.0 }
  0xe8   : > { %v758_v56 = vpack.c.bf16 %v540_v54, %v540_v54  ;;  %v554_v57 = vsel %vm552_vm3, %v540_v54, 0.0  ;;  %v563_v58 = vmul.f32 %v540_v54, %v540_v54 }
  0xe9   : > { %v555_v59 = vadd.f32 %v554_v57, %v553_v55 }
  0xea   : > { %551 = vst.msk [vmem:[%s392_s22 + $0x4] sm:$0xf] %vm549_vm2, %v758_v56  ;;  %v565_v61 = vsel %vm552_vm3, %v563_v58, 0.0 }
  0xeb   : > { %v556_v62 = vrot.slane %v555_v59, 4  ;;  %v566_v63 = vadd.f32 %v565_v61, %v564_v60 }
  0xed   : > { %v557_v0 = vadd.f32 %v556_v62, %v555_v59  ;;  %v567_v1 = vrot.slane %v566_v63, 4 }
  0xef   : > { %v558_v2 = vrot.slane %v557_v0, 2  ;;  %v568_v3 = vadd.f32 %v567_v1, %v566_v63 }
  0xf1   : > { %v559_v4 = vadd.f32 %v558_v2, %v557_v0  ;;  %v569_v5 = vrot.slane %v568_v3, 2 }
  0xf3   : > { %v560_v6 = vrot.slane %v559_v4, 1  ;;  %v570_v7 = vadd.f32 %v569_v5, %v568_v3 }
  0xf5   : > { %v571_v8 = vrot.slane %v570_v7, 1  ;;  %v561_v9 = vadd.f32 %v560_v6, %v559_v4 }
  0xf7   : > { %v572_v10 = vadd.f32 %v571_v8, %v570_v7 }
  0xf9   : > { %v574_v11 = vsel %vm573_vm4, %v561_v9, %v572_v10 }
  0xfa   : > { %576 = vst.msk [vmem:[%s401_s26] sm:$0x3] %vm575_vm5, %v574_v11 }
  0xfb PF: > { %s19_s9 = sadd.s32 1, %s859_s9   ;;  %s1011_s27 = smov %s851_s29 }
  0xfc   : > { %p16_p8 = scmp.ge.s32.totalorder %s19_s9, 6   ;;  %s1012_s28 = smov %s855_s30 }
  0xfd   : > { %s1013_s29 = smov %s1016_s10  ;;  %s1014_s30 = smov %s1020_s11 }
  0xfe   :  { %18 = sbr.rel (!%p16_p8) target bundleno = 3 (0x3), region = 93 }

// kernel: pointgen_forward.7
= control target key start
LH: loop header
LB: loop body
LE: loop exit
PB: predicated region body
PF: predicated region fallthrough
CT: control target
= control target key end

     0   :  { %s773_s24 = smov 0   ;;  %s775_s25 = smov 0   ;;  %s853_s0 = inlined_call_operand.vmem [shape: bf16[2,32,8], index: 0, kind: input, shape index: {}]   ;;  %s854_s1 = inlined_call_operand.vmem [shape: f32[2,32,3], index: 1, kind: input, shape index: {}]   ;;  %s855_s2 = inlined_call_operand.vmem [shape: f32[1,8], index: 2, kind: input, shape index: {}]   ;;  %s856_s3 = inlined_call_operand.vmem [shape: f32[1,8], index: 3, kind: input, shape index: {}]   ;;  %s857_s4 = inlined_call_operand.vmem [shape: bf16[8,3], index: 4, kind: input, shape index: {}]   ;;  %s858_s5 = inlined_call_operand.vmem [shape: f32[3,3], index: 5, kind: input, shape index: {}]   ;;  %s859_s6 = inlined_call_operand.vmem [shape: f32[1,3], index: 6, kind: input, shape index: {}]   ;;  %s860_s7 = inlined_call_operand.vmem [shape: f32[2,32,3], index: 7, kind: output, shape index: {}]  }
   0x1   :  { %s777_s26 = smov 0   ;;  %s779_s27 = smov 0  }
   0x2   :  { %s781_s28 = smov 0  }
   0x3 LB: > { %s26_s29 = sadd.s32 1, %s718_s26  ;;  %s29_s30 = sadd.s32 1, %s722_s27  ;;  %s726_s28 = sphi %s781_s28, %s17_s28   ;;  %s722_s27 = sphi %s779_s27, %s864_s27   ;;  %s718_s26 = sphi %s777_s26, %s863_s26   ;;  %s714_s25 = sphi %s775_s25, %s862_s25   ;;  %s710_s24 = sphi %s773_s24, %s861_s24  }
   0x4   : > { %p27_p0 = scmp.ge.s32.totalorder %s26_s29, 2  ;;  %p607_p1 = scmp.ge.s32.totalorder %s726_s28, 1 }
   0x5   : > { %p275_p2 = scmp.lt.s32.totalorder %s726_s28, 5 }
   0x6   : > { %s866_s29 = smov (%p27_p0, %s26_s29), 0  ;;  %s868_s30 = smov (!%p27_p0, %s29_s30), %s722_s27 }
   0x7   : > { %p276_p3 = pnand %p607_p1, %p275_p2  ;;  %p31_p4 = scmp.ge.s32.totalorder %s868_s30, 2 }
   0x8   : > { %s608_s10 = sshll.u32 (!%p276_p3), %s710_s24, 1  ;;  %p325_p5 = scmp.lt.s32.totalorder (!%p276_p3), %s714_s25, 1 }
   0x9   : > { %s870_s30 = smov (%p31_p4, %s868_s30), 0  ;;  %279 = sbr.rel (%p276_p3) target bundleno = 247 (0xf7), region = 48 }
   0xa   : > { %p327_p6 = scmp.lt.s32.totalorder (!%p276_p3), %s608_s10, 3 }
   0xe   : > { %v380_v0 = vld [vmem:[%s857_s4] sm:$0xf]  ;;  %vm436_vm0 = vcmask 1043456   ;;  %v728_v1 = vmov 0.0   ;;  %vm729_vm1 = vmmov 0   ;;  %s872_s25 = smov (!%p325_p5, %s714_s25), 1  ;;  %v394_v20 = vlaneseq }
   0xf   : > { %629 = vmatprep.subr.bf16.mxu0 %v728_v1  ;;  %v438_v2 = vsel %vm436_vm0, %v380_v0, 0  ;;  %631 = vmatprep.mubr.msk.bf16.mxu0 %vm729_vm1, %v728_v1  ;;  %v730_v3 = vmov 1   ;;  %v731_v4 = vmov 0   ;;  %s874_s10 = smov (!%p327_p6, %s608_s10), 3  ;;  %s609_s11 = sshll.u32 %s872_s25, 2  ;;  %vm432_vm2 = vcmask 64512  }
  0x10   : > { %630 = vmatpush3.bf16.msra.mxu0 %v438_v2  ;;  %681 = vset.pattern.permute.xlu1 %v730_v3  ;;  %s809_s12 = sadd.s32 %s609_s11, %s874_s10  ;;  %v617_v6 = vld [vmem:[%s855_s2] ss:$0 sm:$0xff]  ;;  %v732_v19 = vmov 2   ;;  %v395_v21 = vshrl.u32 %v394_v20, 7  ;;  %vm492_vm3 = vcmask 23552  }
  0x11   : > { %680 = vset.pattern.permute.xlu0 %v731_v4  ;;  %s610_s13 = sshll.u32 %s809_s12, 2  ;;  %s613_s14 = sshll.u32 %s809_s12, 3  ;;  %v618_v10 = vld [vmem:[%s856_s3] ss:$0 sm:$0xff] }
  0x12   : > { %s332_s17 = scalar_lea.vmem %s853_s0, %s610_s13  ;;  %s342_s20 = scalar_lea.vmem %s854_s1, %s613_s14  ;;  %v410_v23 = vsub.s32 1, %v395_v21  ;;  %v396_v24 = vsub.s32 0, %v395_v21  ;;  %v383_v25 = vld [vmem:[%s858_s5] sm:$0x7]  ;;  %v426_v30 = vsub.s32 2, %v395_v21 }
  0x13   : > { %v624_v5 = vld [vmem:[%s332_s17] sm:$0xff]   ;;  %v382_v11 = vld [vmem:[%s342_s20 + $0x8] sm:$0xff]  ;;  %s352_s15 = scalar_lea.vmem %s860_s7, %s613_s14 }
  0x14   : > { %v381_v7 = vld [vmem:[%s342_s20] sm:$0xff]  ;;  %v625_v8 = vunpack.c.l.bf16 %v624_v5  ;;  %v626_v9 = vunpack.c.h.bf16 %v624_v5  ;;  %v411_v28 = vrot.slane %v383_v25, %v410_v23  ;;  %v397_v29 = vrot.slane %v383_v25, %v396_v24 }
  0x15   : > { %401 = vperm.xlu1 %681, %v381_v7   ;;  %386 = vperm.xlu0 %680, %v381_v7   ;;  %v427_v34 = vrot.slane %v383_v25, %v426_v30  ;;  %v620_v45 = vld [vmem:[%s859_s6] ss:$0 sm:$0xff] }
  0x16   : > { %v366_v12 = vmul.f32 %v625_v8, %v617_v6  ;;  %v367_v13 = vmul.f32 %v626_v9, %v617_v6 }
  0x18   : > { %v375_v14 = vadd.f32 %v618_v10, %v366_v12  ;;  %v376_v15 = vadd.f32 %v618_v10, %v367_v13 }
  0x19   : > { %405 = vperm.xlu1 %681, %v382_v11   ;;  %391 = vperm.xlu0 %680, %v382_v11  }
  0x1a   : > { %v377_v16 = vmax.f32 %v375_v14, 0.0  ;;  %v378_v17 = vmax.f32 %v376_v15, 0.0 }
  0x1c   : > { %v379_v18 = vpack.c.bf16 %v378_v17, %v377_v16 }
  0x1d   : > { %683 = vset.pattern.permute.xlu1 %v732_v19  ;;  %682 = vset.pattern.permute.xlu0 %v732_v19 }
  0x1e   : > { %421 = vperm.xlu1 %683, %v382_v11   ;;  %417 = vperm.xlu0 %682, %v381_v7  }
  0x1f   : > { %632 = vmatmul.mubr.msk.bf16.vlgmr.msra.gmra.mxu0 %vm432_vm2, %v379_v18 }
  0x90   : > { %v387_v22 = vpop.permute.xlu0 %386  ;;  %v402_v26 = vpop.permute.xlu1 %401 }
  0x91   : > { %v412_v32 = vmul.f32 %v411_v28, %v402_v26  ;;  %v398_v33 = vmul.f32 %v397_v29, %v387_v22 }
  0x93   : > { %v414_v36 = vadd.f32 %v412_v32, %v398_v33 }
  0x94   : > { %v392_v27 = vpop.permute.xlu0 %391  ;;  %v406_v31 = vpop.permute.xlu1 %405 }
  0x95   : > { %v413_v37 = vmul.f32 %v411_v28, %v406_v31  ;;  %v399_v38 = vmul.f32 %v397_v29, %v392_v27 }
  0x97   : > { %v415_v41 = vadd.f32 %v413_v37, %v399_v38 }
  0x99   : > { %v418_v35 = vpop.permute.xlu0 %417  ;;  %v422_v40 = vpop.permute.xlu1 %421 }
  0x9a   : > { %v428_v39 = vmul.f32 %v427_v34, %v418_v35  ;;  %v429_v42 = vmul.f32 %v427_v34, %v422_v40 }
  0x9c   : > { %v430_v43 = vadd.f32 %v428_v39, %v414_v36  ;;  %v431_v49 = vadd.f32 %v429_v42, %v415_v41 }
  0xdf   : > { %v474_v44 = vpop.f32.mrf.mxu0 }
  0xe0   : > { %v475_v46 = vadd.f32 %v474_v44, %v430_v43 }
  0xe1   : > { %v633_v47 = vpop.f32.mrf.mxu0 }
  0xe2   : > { %v488_v48 = vadd.f32 %v620_v45, %v475_v46 }
  0xe3   : > { %v477_v50 = vpop.f32.mrf.mxu0 }
  0xe4   : > { %684 = vtanh.f32 %v488_v48  ;;  %v478_v51 = vadd.f32 %v477_v50, %v431_v49 }
  0xe5   : > { %v634_v52 = vpop.f32.mrf.mxu0 }
  0xe6   : > { %v489_v53 = vadd.f32 %v620_v45, %v478_v51 }
  0xe8   : > { %686 = vtanh.f32 %v489_v53 }
  0xf1   : > { %v685_v54 = vpop.eup %684 }
  0xf2   : > { %493 = vst.msk [vmem:[%s352_s15] sm:$0xff] %vm492_vm3, %v685_v54 }
  0xf5   : > { %v687_v55 = vpop.eup %686 }
  0xf6   : > { %494 = vst.msk [vmem:[%s352_s15 + $0x8] sm:$0xff] %vm492_vm3, %v687_v55 }
  0xf7 PF: > { %s17_s28 = sadd.s32 1, %s726_s28   ;;  %s861_s24 = smov %s718_s26 }
  0xf8   : > { %p14_p7 = scmp.ge.s32.totalorder %s17_s28, 6   ;;  %s862_s25 = smov %s722_s27 }
  0xf9   : > { %s863_s26 = smov %s866_s29  ;;  %s864_s27 = smov %s870_s30 }
  0xfa   :  { %16 = sbr.rel (!%p14_p7) target bundleno = 3 (0x3), region = 81 }

</bundles_post_ra>
